<compile_context>
chip_gen: v6e
topology: v6e:2x2x1
jax: 0.10.0
libtpu: 0.0.40
codegen_flags: <defaults>
</compile_context>

<pallas_src>
import jax
import jax.numpy as jnp
from jax.experimental import pallas as pl
from jax.experimental.pallas import tpu as pltpu


def permute_kernel(x_ref, o_ref):
    # x_ref: (1, H, TS, D)  ->  o_ref: (1, TS, H*D)
    # out[0, s, h*D + d] = x[0, h, s, d]
    H = x_ref.shape[1]
    D = x_ref.shape[3]
    if H % 2 == 0 and 2 * D == 128:
        # Pairwise copies: each store is a full 128-lane, unmasked vst.
        for p in range(H // 2):
            o_ref[0, :, p * 128:(p + 1) * 128] = jnp.concatenate(
                [x_ref[0, 2 * p, :, :], x_ref[0, 2 * p + 1, :, :]], axis=-1
            )
    else:
        # Fallback: per-head copies (masked stores, still correct).
        for h in range(H):
            o_ref[0, :, h * D:(h + 1) * D] = x_ref[0, h, :, :]


def _pick_tile(S):
    # Prefer an even number of tiles (megacore balance) while keeping
    # S % ts == 0 (no silent truncation) and >= 2 tiles for pipelining.
    for ts in (192, 128, 96, 64):
        if S % ts == 0 and S // ts >= 2:
            return ts
    return S


def permute_0213(x):
    B, H, S, D = x.shape
    HD = H * D
    ts = _pick_tile(S)

    out_flat = pl.pallas_call(
        permute_kernel,
        out_shape=jax.ShapeDtypeStruct((B, S, HD), x.dtype),
        grid_spec=pl.GridSpec(
            grid=(S // ts,),
            in_specs=[pl.BlockSpec((1, H, ts, D), lambda s: (0, 0, s, 0))],
            out_specs=pl.BlockSpec((1, ts, HD), lambda s: (0, s, 0)),
        ),
        compiler_params=pltpu.CompilerParams(
            dimension_semantics=("parallel",),
        ),
        cost_estimate=pl.CostEstimate(
            flops=0,
            transcendentals=0,
            bytes_accessed=2 * B * H * S * D * x.dtype.itemsize,
        ),
    )(x)

    # Free, contiguous view back to the module's output layout [B, S, H, D].
    return out_flat.reshape(B, S, H, D)


if __name__ == "__main__":
    key = jax.random.PRNGKey(0)
    # Shape implied by the module's forward: [1, 12, 384, 64]
    x = jax.random.normal(key, (1, 12, 384, 64), dtype=jnp.float32)

    out = permute_0213(x)
    out = jax.block_until_ready(out)

    ref = jnp.transpose(x, (0, 2, 1, 3))
    assert out.shape == (1, 384, 12, 64), out.shape
    assert out.dtype == x.dtype
    assert bool(jnp.array_equal(out, ref))

    print("KERNEL_OK")
</pallas_src>

<mosaic_0001>
module attributes {stable_mosaic.version = 11 : i64} {
  func.func @permute_kernel(%arg0: i32, %arg1: memref<1x12x192x64xf32, #tpu.memory_space<vmem>>, %arg2: memref<1x192x768xf32, #tpu.memory_space<vmem>>) attributes {dimension_semantics = [#tpu.dimension_semantics<parallel>], iteration_bounds = array<i64: 2>, scalar_prefetch = 0 : i64, scratch_operands = 0 : i64, tpu.core_type = #tpu.core_type<tc>, window_params = [{transform_indices = @transform_0, window_bounds = array<i64: 1, 12, 192, 64>}, {transform_indices = @transform_1, window_bounds = array<i64: 1, 192, 768>}]} {
    %c0 = arith.constant 0 : index
    %c0_0 = arith.constant 0 : index
    %c0_1 = arith.constant 0 : index
    %c0_2 = arith.constant 0 : index
    %0 = vector.load %arg1[%c0, %c0_0, %c0_1, %c0_2] : memref<1x12x192x64xf32, #tpu.memory_space<vmem>>, vector<1x1x192x64xf32>
    %1 = vector.shape_cast %0 : vector<1x1x192x64xf32> to vector<192x64xf32>
    %c0_3 = arith.constant 0 : index
    %c1 = arith.constant 1 : index
    %c0_4 = arith.constant 0 : index
    %c0_5 = arith.constant 0 : index
    %2 = vector.load %arg1[%c0_3, %c1, %c0_4, %c0_5] : memref<1x12x192x64xf32, #tpu.memory_space<vmem>>, vector<1x1x192x64xf32>
    %3 = vector.shape_cast %2 : vector<1x1x192x64xf32> to vector<192x64xf32>
    %4 = tpu.concatenate %1, %3 in 1 : vector<192x64xf32>, vector<192x64xf32> -> vector<192x128xf32>
    %c0_6 = arith.constant 0 : index
    %c0_7 = arith.constant 0 : index
    %c0_8 = arith.constant 0 : index
    %5 = vector.load %arg2[%c0_6, %c0_7, %c0_8] : memref<1x192x768xf32, #tpu.memory_space<vmem>>, vector<1x192x128xf32>
    %6 = vector.shape_cast %5 : vector<1x192x128xf32> to vector<192x128xf32>
    %7 = vector.shape_cast %4 : vector<192x128xf32> to vector<1x192x128xf32>
    tpu.vector_store %arg2[%c0_6, %c0_7, %c0_8], %7 {strides = array<i32>} : memref<1x192x768xf32, #tpu.memory_space<vmem>>, vector<1x192x128xf32>,
    %c0_9 = arith.constant 0 : index
    %c2 = arith.constant 2 : index
    %c0_10 = arith.constant 0 : index
    %c0_11 = arith.constant 0 : index
    %8 = vector.load %arg1[%c0_9, %c2, %c0_10, %c0_11] : memref<1x12x192x64xf32, #tpu.memory_space<vmem>>, vector<1x1x192x64xf32>
    %9 = vector.shape_cast %8 : vector<1x1x192x64xf32> to vector<192x64xf32>
    %c0_12 = arith.constant 0 : index
    %c3 = arith.constant 3 : index
    %c0_13 = arith.constant 0 : index
    %c0_14 = arith.constant 0 : index
    %10 = vector.load %arg1[%c0_12, %c3, %c0_13, %c0_14] : memref<1x12x192x64xf32, #tpu.memory_space<vmem>>, vector<1x1x192x64xf32>
    %11 = vector.shape_cast %10 : vector<1x1x192x64xf32> to vector<192x64xf32>
    %12 = tpu.concatenate %9, %11 in 1 : vector<192x64xf32>, vector<192x64xf32> -> vector<192x128xf32>
    %c0_15 = arith.constant 0 : index
    %c0_16 = arith.constant 0 : index
    %c128 = arith.constant 128 : index
    %13 = vector.load %arg2[%c0_15, %c0_16, %c128] : memref<1x192x768xf32, #tpu.memory_space<vmem>>, vector<1x192x128xf32>
    %14 = vector.shape_cast %13 : vector<1x192x128xf32> to vector<192x128xf32>
    %15 = vector.shape_cast %12 : vector<192x128xf32> to vector<1x192x128xf32>
    tpu.vector_store %arg2[%c0_15, %c0_16, %c128], %15 {strides = array<i32>} : memref<1x192x768xf32, #tpu.memory_space<vmem>>, vector<1x192x128xf32>,
    %c0_17 = arith.constant 0 : index
    %c4 = arith.constant 4 : index
    %c0_18 = arith.constant 0 : index
    %c0_19 = arith.constant 0 : index
    %16 = vector.load %arg1[%c0_17, %c4, %c0_18, %c0_19] : memref<1x12x192x64xf32, #tpu.memory_space<vmem>>, vector<1x1x192x64xf32>
    %17 = vector.shape_cast %16 : vector<1x1x192x64xf32> to vector<192x64xf32>
    %c0_20 = arith.constant 0 : index
    %c5 = arith.constant 5 : index
    %c0_21 = arith.constant 0 : index
    %c0_22 = arith.constant 0 : index
    %18 = vector.load %arg1[%c0_20, %c5, %c0_21, %c0_22] : memref<1x12x192x64xf32, #tpu.memory_space<vmem>>, vector<1x1x192x64xf32>
    %19 = vector.shape_cast %18 : vector<1x1x192x64xf32> to vector<192x64xf32>
    %20 = tpu.concatenate %17, %19 in 1 : vector<192x64xf32>, vector<192x64xf32> -> vector<192x128xf32>
    %c0_23 = arith.constant 0 : index
    %c0_24 = arith.constant 0 : index
    %c256 = arith.constant 256 : index
    %21 = vector.load %arg2[%c0_23, %c0_24, %c256] : memref<1x192x768xf32, #tpu.memory_space<vmem>>, vector<1x192x128xf32>
    %22 = vector.shape_cast %21 : vector<1x192x128xf32> to vector<192x128xf32>
    %23 = vector.shape_cast %20 : vector<192x128xf32> to vector<1x192x128xf32>
    tpu.vector_store %arg2[%c0_23, %c0_24, %c256], %23 {strides = array<i32>} : memref<1x192x768xf32, #tpu.memory_space<vmem>>, vector<1x192x128xf32>,
    %c0_25 = arith.constant 0 : index
    %c6 = arith.constant 6 : index
    %c0_26 = arith.constant 0 : index
    %c0_27 = arith.constant 0 : index
    %24 = vector.load %arg1[%c0_25, %c6, %c0_26, %c0_27] : memref<1x12x192x64xf32, #tpu.memory_space<vmem>>, vector<1x1x192x64xf32>
    %25 = vector.shape_cast %24 : vector<1x1x192x64xf32> to vector<192x64xf32>
    %c0_28 = arith.constant 0 : index
    %c7 = arith.constant 7 : index
    %c0_29 = arith.constant 0 : index
    %c0_30 = arith.constant 0 : index
    %26 = vector.load %arg1[%c0_28, %c7, %c0_29, %c0_30] : memref<1x12x192x64xf32, #tpu.memory_space<vmem>>, vector<1x1x192x64xf32>
    %27 = vector.shape_cast %26 : vector<1x1x192x64xf32> to vector<192x64xf32>
    %28 = tpu.concatenate %25, %27 in 1 : vector<192x64xf32>, vector<192x64xf32> -> vector<192x128xf32>
    %c0_31 = arith.constant 0 : index
    %c0_32 = arith.constant 0 : index
    %c384 = arith.constant 384 : index
    %29 = vector.load %arg2[%c0_31, %c0_32, %c384] : memref<1x192x768xf32, #tpu.memory_space<vmem>>, vector<1x192x128xf32>
    %30 = vector.shape_cast %29 : vector<1x192x128xf32> to vector<192x128xf32>
    %31 = vector.shape_cast %28 : vector<192x128xf32> to vector<1x192x128xf32>
    tpu.vector_store %arg2[%c0_31, %c0_32, %c384], %31 {strides = array<i32>} : memref<1x192x768xf32, #tpu.memory_space<vmem>>, vector<1x192x128xf32>,
    %c0_33 = arith.constant 0 : index
    %c8 = arith.constant 8 : index
    %c0_34 = arith.constant 0 : index
    %c0_35 = arith.constant 0 : index
    %32 = vector.load %arg1[%c0_33, %c8, %c0_34, %c0_35] : memref<1x12x192x64xf32, #tpu.memory_space<vmem>>, vector<1x1x192x64xf32>
    %33 = vector.shape_cast %32 : vector<1x1x192x64xf32> to vector<192x64xf32>
    %c0_36 = arith.constant 0 : index
    %c9 = arith.constant 9 : index
    %c0_37 = arith.constant 0 : index
    %c0_38 = arith.constant 0 : index
    %34 = vector.load %arg1[%c0_36, %c9, %c0_37, %c0_38] : memref<1x12x192x64xf32, #tpu.memory_space<vmem>>, vector<1x1x192x64xf32>
    %35 = vector.shape_cast %34 : vector<1x1x192x64xf32> to vector<192x64xf32>
    %36 = tpu.concatenate %33, %35 in 1 : vector<192x64xf32>, vector<192x64xf32> -> vector<192x128xf32>
    %c0_39 = arith.constant 0 : index
    %c0_40 = arith.constant 0 : index
    %c512 = arith.constant 512 : index
    %37 = vector.load %arg2[%c0_39, %c0_40, %c512] : memref<1x192x768xf32, #tpu.memory_space<vmem>>, vector<1x192x128xf32>
    %38 = vector.shape_cast %37 : vector<1x192x128xf32> to vector<192x128xf32>
    %39 = vector.shape_cast %36 : vector<192x128xf32> to vector<1x192x128xf32>
    tpu.vector_store %arg2[%c0_39, %c0_40, %c512], %39 {strides = array<i32>} : memref<1x192x768xf32, #tpu.memory_space<vmem>>, vector<1x192x128xf32>,
    %c0_41 = arith.constant 0 : index
    %c10 = arith.constant 10 : index
    %c0_42 = arith.constant 0 : index
    %c0_43 = arith.constant 0 : index
    %40 = vector.load %arg1[%c0_41, %c10, %c0_42, %c0_43] : memref<1x12x192x64xf32, #tpu.memory_space<vmem>>, vector<1x1x192x64xf32>
    %41 = vector.shape_cast %40 : vector<1x1x192x64xf32> to vector<192x64xf32>
    %c0_44 = arith.constant 0 : index
    %c11 = arith.constant 11 : index
    %c0_45 = arith.constant 0 : index
    %c0_46 = arith.constant 0 : index
    %42 = vector.load %arg1[%c0_44, %c11, %c0_45, %c0_46] : memref<1x12x192x64xf32, #tpu.memory_space<vmem>>, vector<1x1x192x64xf32>
    %43 = vector.shape_cast %42 : vector<1x1x192x64xf32> to vector<192x64xf32>
    %44 = tpu.concatenate %41, %43 in 1 : vector<192x64xf32>, vector<192x64xf32> -> vector<192x128xf32>
    %c0_47 = arith.constant 0 : index
    %c0_48 = arith.constant 0 : index
    %c640 = arith.constant 640 : index
    %45 = vector.load %arg2[%c0_47, %c0_48, %c640] : memref<1x192x768xf32, #tpu.memory_space<vmem>>, vector<1x192x128xf32>
    %46 = vector.shape_cast %45 : vector<1x192x128xf32> to vector<192x128xf32>
    %47 = vector.shape_cast %44 : vector<192x128xf32> to vector<1x192x128xf32>
    tpu.vector_store %arg2[%c0_47, %c0_48, %c640], %47 {strides = array<i32>} : memref<1x192x768xf32, #tpu.memory_space<vmem>>, vector<1x192x128xf32>,
    return
  }
  func.func @transform_0(%arg0: i32) -> (i32, i32, i32, i32) {
    %c0_i32 = arith.constant 0 : i32
    %c0_i32_0 = arith.constant 0 : i32
    %c0_i32_1 = arith.constant 0 : i32
    %c0_i32_2 = arith.constant 0 : i32
    return %c0_i32, %c0_i32_0, %arg0, %c0_i32_1 : i32, i32, i32, i32
  }
  func.func @transform_1(%arg0: i32) -> (i32, i32, i32) {
    %c0_i32 = arith.constant 0 : i32
    %c0_i32_0 = arith.constant 0 : i32
    %c0_i32_1 = arith.constant 0 : i32
    return %c0_i32, %arg0, %c0_i32_0 : i32, i32, i32
  }
}

</mosaic_0001>

<bundles_post_ra>
// kernel: tpu_custom_call.1
= control target key start
LH: loop header
LB: loop body
LE: loop exit
PB: predicated region body
PF: predicated region fallthrough
CT: control target
= control target key end

     0   :  { %6 = vsyncpa [#allocation4], 0  ;;  %s4360_s0 = inlined_call_operand.vmem [shape: f32[1,12,384,64], index: 0, kind: input, shape index: {}]   ;;  %s4361_s1 = inlined_call_operand.hbm [shape: f32[1,384,768], index: 1, kind: output, shape index: {}]  }
   0x1   :  { %8 = vsyncpa [#allocation4 + $0x1], 0  ;;  %s2944_s6 = smov 0   ;;  %s2946_s7 = smov 0  }
   0x2   :  { %s2948_s8 = smov 0   ;;  %s2950_s9 = smov 0  }
   0x3 LB: > { %s2547_s10 = sadd.s32 4294967295, %s2928_s9   ;;  %s2548_s11 = sadd.s32 4294967294, %s2928_s9   ;;  %s2928_s9 = sphi %s2950_s9, %s4367_s9   ;;  %s2924_s8 = sphi %s2948_s8, %s4366_s8   ;;  %s2920_s7 = sphi %s2946_s7, %s4365_s7   ;;  %s2916_s6 = sphi %s2944_s6, %s4364_s6  }
   0x4   : > { %s2967_s12 = sadd.s32 1, %s2928_s9   ;;  %s21_s13 = sadd.s32 1, %s2924_s8 }
   0x5   : > { %s18_s14 = ssub.s32 %s2928_s9, %s2967_s12  ;;  %p28_p0 = scmp.ne.s32.totalorder %s2924_s8, %s2920_s7 }
   0x6   : > { %p19_p1 = scmp.eq.s32.totalorder %s18_s14, 0  ;;  %p29_p2 = scmp.eq.s32.totalorder %s2928_s9, 0 }
   0x7   : > { %p58_p3 = scmp.eq.s32.totalorder %s2547_s10, 1  ;;  %p63_p4 = scmp.ne.s32.totalorder %s2920_s7, %s2916_s6 }
   0x8   : > { %s2980_s15 = scalar_select %p19_p1, %s2924_s8, %s21_s13  }
   0x9   : > { %p30_p5 = por %p29_p2, %p28_p0  ;;  %p2982_p6 = por %p58_p3, %p28_p0 }
   0xa   : > { %p64_p7 = scmp.eq.s32.totalorder %s2548_s11, 1  ;;  %p2550_p9 = scmp.ge.s32.totalorder %s2928_s9, 2 }
   0xc   : > { %p2986_p8 = por %p64_p7, %p63_p4  ;;  %80 = sbr.rel (%p2550_p9) target bundleno = 166 (0xa6), region = 16 }
  0x11   : > { %83 = sbr.rel (!%p30_p5) target bundleno = 166 (0xa6), region = 20  ;;  %s85_s18 = sand.u32 (%p30_p5), 1, %s2924_s8  }
  0x12   : > { %s2820_s19 = smul.u32 (%p30_p5), 192, %s2928_s9 }
  0x13   : > { %s2821_s20 = smul.u32 (%p30_p5), 2304, %s85_s18 }
  0x14   : > { %s2998_s23 = scalar_lea.vmem (%p30_p5), %s4360_s0, %s2820_s19 }
  0x15   : > { %v693_v0 = vld [vmem:[%s2998_s23] sm:$0xff] (%p30_p5)  ;;  %v695_v1 = vld [vmem:[%s2998_s23 + $0x8] sm:$0xff] (%p30_p5)  ;;  %v697_v2 = vld [vmem:[%s2998_s23 + $0x10] sm:$0xff] (%p30_p5)  ;;  %s3003_s24 = scalar_lea.vmem (%p30_p5), [#allocation2], %s2821_s20 }
  0x16   : > { %694 = vst [vmem:[%s3003_s24] sm:$0xff] %v693_v0  ;;  %696 = vst [vmem:[%s3003_s24 + $0x8] sm:$0xff] %v695_v1  ;;  %v699_v3 = vld [vmem:[%s2998_s23 + $0x18] sm:$0xff]  ;;  %v701_v4 = vld [vmem:[%s2998_s23 + $0x20] sm:$0xff] }
  0x17   : > { %698 = vst [vmem:[%s3003_s24 + $0x10] sm:$0xff] %v697_v2  ;;  %v703_v5 = vld [vmem:[%s2998_s23 + $0x28] sm:$0xff]  ;;  %700 = vst [vmem:[%s3003_s24 + $0x18] sm:$0xff] %v699_v3  ;;  %v705_v6 = vld [vmem:[%s2998_s23 + $0x30] sm:$0xff] }
  0x18   : > { %702 = vst [vmem:[%s3003_s24 + $0x20] sm:$0xff] %v701_v4  ;;  %704 = vst [vmem:[%s3003_s24 + $0x28] sm:$0xff] %v703_v5  ;;  %v707_v7 = vld [vmem:[%s2998_s23 + $0x38] sm:$0xff]  ;;  %v709_v8 = vld [vmem:[%s2998_s23 + $0x40] sm:$0xff] }
  0x19   : > { %706 = vst [vmem:[%s3003_s24 + $0x30] sm:$0xff] %v705_v6  ;;  %708 = vst [vmem:[%s3003_s24 + $0x38] sm:$0xff] %v707_v7  ;;  %v711_v9 = vld [vmem:[%s2998_s23 + $0x48] sm:$0xff]  ;;  %v713_v10 = vld [vmem:[%s2998_s23 + $0x50] sm:$0xff] }
  0x1a   : > { %710 = vst [vmem:[%s3003_s24 + $0x40] sm:$0xff] %v709_v8  ;;  %v715_v11 = vld [vmem:[%s2998_s23 + $0x58] sm:$0xff]  ;;  %712 = vst [vmem:[%s3003_s24 + $0x48] sm:$0xff] %v711_v9  ;;  %v717_v12 = vld [vmem:[%s2998_s23 + $0x60] sm:$0xff] }
  0x1b   : > { %714 = vst [vmem:[%s3003_s24 + $0x50] sm:$0xff] %v713_v10  ;;  %716 = vst [vmem:[%s3003_s24 + $0x58] sm:$0xff] %v715_v11  ;;  %v719_v13 = vld [vmem:[%s2998_s23 + $0x68] sm:$0xff]  ;;  %v721_v14 = vld [vmem:[%s2998_s23 + $0x70] sm:$0xff] }
  0x1c   : > { %718 = vst [vmem:[%s3003_s24 + $0x60] sm:$0xff] %v717_v12  ;;  %720 = vst [vmem:[%s3003_s24 + $0x68] sm:$0xff] %v719_v13  ;;  %v723_v15 = vld [vmem:[%s2998_s23 + $0x78] sm:$0xff]  ;;  %v725_v16 = vld [vmem:[%s2998_s23 + $0x80] sm:$0xff] }
  0x1d   : > { %722 = vst [vmem:[%s3003_s24 + $0x70] sm:$0xff] %v721_v14  ;;  %v727_v17 = vld [vmem:[%s2998_s23 + $0x88] sm:$0xff]  ;;  %724 = vst [vmem:[%s3003_s24 + $0x78] sm:$0xff] %v723_v15  ;;  %v729_v18 = vld [vmem:[%s2998_s23 + $0x90] sm:$0xff] }
  0x1e   : > { %726 = vst [vmem:[%s3003_s24 + $0x80] sm:$0xff] %v725_v16  ;;  %728 = vst [vmem:[%s3003_s24 + $0x88] sm:$0xff] %v727_v17  ;;  %v731_v19 = vld [vmem:[%s2998_s23 + $0x98] sm:$0xff]  ;;  %v733_v20 = vld [vmem:[%s2998_s23 + $0xa0] sm:$0xff] }
  0x1f   : > { %730 = vst [vmem:[%s3003_s24 + $0x90] sm:$0xff] %v729_v18  ;;  %732 = vst [vmem:[%s3003_s24 + $0x98] sm:$0xff] %v731_v19  ;;  %v735_v21 = vld [vmem:[%s2998_s23 + $0xa8] sm:$0xff]  ;;  %v737_v22 = vld [vmem:[%s2998_s23 + $0xb0] sm:$0xff] }
  0x20   : > { %734 = vst [vmem:[%s3003_s24 + $0xa0] sm:$0xff] %v733_v20  ;;  %v739_v23 = vld [vmem:[%s2998_s23 + $0xb8] sm:$0xff]  ;;  %736 = vst [vmem:[%s3003_s24 + $0xa8] sm:$0xff] %v735_v21  ;;  %v741_v24 = vld [vmem:[%s2998_s23 + $0x180] sm:$0xff] }
  0x21   : > { %738 = vst [vmem:[%s3003_s24 + $0xb0] sm:$0xff] %v737_v22  ;;  %740 = vst [vmem:[%s3003_s24 + $0xb8] sm:$0xff] %v739_v23  ;;  %v743_v25 = vld [vmem:[%s2998_s23 + $0x188] sm:$0xff]  ;;  %v745_v26 = vld [vmem:[%s2998_s23 + $0x190] sm:$0xff] }
  0x22   : > { %742 = vst [vmem:[%s3003_s24 + $0xc0] sm:$0xff] %v741_v24  ;;  %744 = vst [vmem:[%s3003_s24 + $0xc8] sm:$0xff] %v743_v25  ;;  %v747_v27 = vld [vmem:[%s2998_s23 + $0x198] sm:$0xff]  ;;  %v749_v28 = vld [vmem:[%s2998_s23 + $0x1a0] sm:$0xff] }
  0x23   : > { %746 = vst [vmem:[%s3003_s24 + $0xd0] sm:$0xff] %v745_v26  ;;  %v751_v29 = vld [vmem:[%s2998_s23 + $0x1a8] sm:$0xff]  ;;  %748 = vst [vmem:[%s3003_s24 + $0xd8] sm:$0xff] %v747_v27  ;;  %v753_v30 = vld [vmem:[%s2998_s23 + $0x1b0] sm:$0xff] }
  0x24   : > { %750 = vst [vmem:[%s3003_s24 + $0xe0] sm:$0xff] %v749_v28  ;;  %752 = vst [vmem:[%s3003_s24 + $0xe8] sm:$0xff] %v751_v29  ;;  %v755_v31 = vld [vmem:[%s2998_s23 + $0x1b8] sm:$0xff]  ;;  %v757_v32 = vld [vmem:[%s2998_s23 + $0x1c0] sm:$0xff] }
  0x25   : > { %754 = vst [vmem:[%s3003_s24 + $0xf0] sm:$0xff] %v753_v30  ;;  %756 = vst [vmem:[%s3003_s24 + $0xf8] sm:$0xff] %v755_v31  ;;  %v759_v33 = vld [vmem:[%s2998_s23 + $0x1c8] sm:$0xff]  ;;  %v761_v34 = vld [vmem:[%s2998_s23 + $0x1d0] sm:$0xff] }
  0x26   : > { %758 = vst [vmem:[%s3003_s24 + $0x100] sm:$0xff] %v757_v32  ;;  %v763_v35 = vld [vmem:[%s2998_s23 + $0x1d8] sm:$0xff]  ;;  %760 = vst [vmem:[%s3003_s24 + $0x108] sm:$0xff] %v759_v33  ;;  %v765_v36 = vld [vmem:[%s2998_s23 + $0x1e0] sm:$0xff] }
  0x27   : > { %762 = vst [vmem:[%s3003_s24 + $0x110] sm:$0xff] %v761_v34  ;;  %764 = vst [vmem:[%s3003_s24 + $0x118] sm:$0xff] %v763_v35  ;;  %v767_v37 = vld [vmem:[%s2998_s23 + $0x1e8] sm:$0xff]  ;;  %v769_v38 = vld [vmem:[%s2998_s23 + $0x1f0] sm:$0xff] }
  0x28   : > { %766 = vst [vmem:[%s3003_s24 + $0x120] sm:$0xff] %v765_v36  ;;  %768 = vst [vmem:[%s3003_s24 + $0x128] sm:$0xff] %v767_v37  ;;  %v771_v39 = vld [vmem:[%s2998_s23 + $0x1f8] sm:$0xff]  ;;  %v773_v40 = vld [vmem:[%s2998_s23 + $0x200] sm:$0xff] }
  0x29   : > { %770 = vst [vmem:[%s3003_s24 + $0x130] sm:$0xff] %v769_v38  ;;  %v775_v41 = vld [vmem:[%s2998_s23 + $0x208] sm:$0xff]  ;;  %772 = vst [vmem:[%s3003_s24 + $0x138] sm:$0xff] %v771_v39  ;;  %v777_v42 = vld [vmem:[%s2998_s23 + $0x210] sm:$0xff] }
  0x2a   : > { %774 = vst [vmem:[%s3003_s24 + $0x140] sm:$0xff] %v773_v40  ;;  %776 = vst [vmem:[%s3003_s24 + $0x148] sm:$0xff] %v775_v41  ;;  %v779_v43 = vld [vmem:[%s2998_s23 + $0x218] sm:$0xff]  ;;  %v781_v44 = vld [vmem:[%s2998_s23 + $0x220] sm:$0xff] }
  0x2b   : > { %778 = vst [vmem:[%s3003_s24 + $0x150] sm:$0xff] %v777_v42  ;;  %780 = vst [vmem:[%s3003_s24 + $0x158] sm:$0xff] %v779_v43  ;;  %v783_v45 = vld [vmem:[%s2998_s23 + $0x228] sm:$0xff]  ;;  %v785_v46 = vld [vmem:[%s2998_s23 + $0x230] sm:$0xff] }
  0x2c   : > { %782 = vst [vmem:[%s3003_s24 + $0x160] sm:$0xff] %v781_v44  ;;  %v787_v47 = vld [vmem:[%s2998_s23 + $0x238] sm:$0xff]  ;;  %784 = vst [vmem:[%s3003_s24 + $0x168] sm:$0xff] %v783_v45  ;;  %v789_v48 = vld [vmem:[%s2998_s23 + $0x300] sm:$0xff] }
  0x2d   : > { %786 = vst [vmem:[%s3003_s24 + $0x170] sm:$0xff] %v785_v46  ;;  %788 = vst [vmem:[%s3003_s24 + $0x178] sm:$0xff] %v787_v47  ;;  %v791_v49 = vld [vmem:[%s2998_s23 + $0x308] sm:$0xff]  ;;  %v793_v50 = vld [vmem:[%s2998_s23 + $0x310] sm:$0xff] }
  0x2e   : > { %790 = vst [vmem:[%s3003_s24 + $0x180] sm:$0xff] %v789_v48  ;;  %792 = vst [vmem:[%s3003_s24 + $0x188] sm:$0xff] %v791_v49  ;;  %v795_v51 = vld [vmem:[%s2998_s23 + $0x318] sm:$0xff]  ;;  %v797_v52 = vld [vmem:[%s2998_s23 + $0x320] sm:$0xff] }
  0x2f   : > { %794 = vst [vmem:[%s3003_s24 + $0x190] sm:$0xff] %v793_v50  ;;  %v799_v53 = vld [vmem:[%s2998_s23 + $0x328] sm:$0xff]  ;;  %796 = vst [vmem:[%s3003_s24 + $0x198] sm:$0xff] %v795_v51  ;;  %v801_v54 = vld [vmem:[%s2998_s23 + $0x330] sm:$0xff] }
  0x30   : > { %798 = vst [vmem:[%s3003_s24 + $0x1a0] sm:$0xff] %v797_v52  ;;  %800 = vst [vmem:[%s3003_s24 + $0x1a8] sm:$0xff] %v799_v53  ;;  %v803_v55 = vld [vmem:[%s2998_s23 + $0x338] sm:$0xff]  ;;  %v805_v56 = vld [vmem:[%s2998_s23 + $0x340] sm:$0xff] }
  0x31   : > { %802 = vst [vmem:[%s3003_s24 + $0x1b0] sm:$0xff] %v801_v54  ;;  %804 = vst [vmem:[%s3003_s24 + $0x1b8] sm:$0xff] %v803_v55  ;;  %v807_v57 = vld [vmem:[%s2998_s23 + $0x348] sm:$0xff]  ;;  %v809_v58 = vld [vmem:[%s2998_s23 + $0x350] sm:$0xff] }
  0x32   : > { %806 = vst [vmem:[%s3003_s24 + $0x1c0] sm:$0xff] %v805_v56  ;;  %v811_v59 = vld [vmem:[%s2998_s23 + $0x358] sm:$0xff]  ;;  %808 = vst [vmem:[%s3003_s24 + $0x1c8] sm:$0xff] %v807_v57  ;;  %v813_v60 = vld [vmem:[%s2998_s23 + $0x360] sm:$0xff] }
  0x33   : > { %810 = vst [vmem:[%s3003_s24 + $0x1d0] sm:$0xff] %v809_v58  ;;  %812 = vst [vmem:[%s3003_s24 + $0x1d8] sm:$0xff] %v811_v59  ;;  %v815_v61 = vld [vmem:[%s2998_s23 + $0x368] sm:$0xff]  ;;  %v817_v62 = vld [vmem:[%s2998_s23 + $0x370] sm:$0xff] }
  0x34   : > { %814 = vst [vmem:[%s3003_s24 + $0x1e0] sm:$0xff] %v813_v60  ;;  %816 = vst [vmem:[%s3003_s24 + $0x1e8] sm:$0xff] %v815_v61  ;;  %v819_v63 = vld [vmem:[%s2998_s23 + $0x378] sm:$0xff]  ;;  %v821_v0 = vld [vmem:[%s2998_s23 + $0x380] sm:$0xff] }
  0x35   : > { %818 = vst [vmem:[%s3003_s24 + $0x1f0] sm:$0xff] %v817_v62  ;;  %v823_v1 = vld [vmem:[%s2998_s23 + $0x388] sm:$0xff]  ;;  %820 = vst [vmem:[%s3003_s24 + $0x1f8] sm:$0xff] %v819_v63  ;;  %v825_v2 = vld [vmem:[%s2998_s23 + $0x390] sm:$0xff] }
  0x36   : > { %822 = vst [vmem:[%s3003_s24 + $0x200] sm:$0xff] %v821_v0  ;;  %824 = vst [vmem:[%s3003_s24 + $0x208] sm:$0xff] %v823_v1  ;;  %v827_v3 = vld [vmem:[%s2998_s23 + $0x398] sm:$0xff]  ;;  %v829_v4 = vld [vmem:[%s2998_s23 + $0x3a0] sm:$0xff] }
  0x37   : > { %826 = vst [vmem:[%s3003_s24 + $0x210] sm:$0xff] %v825_v2  ;;  %828 = vst [vmem:[%s3003_s24 + $0x218] sm:$0xff] %v827_v3  ;;  %v831_v5 = vld [vmem:[%s2998_s23 + $0x3a8] sm:$0xff]  ;;  %v833_v6 = vld [vmem:[%s2998_s23 + $0x3b0] sm:$0xff] }
  0x38   : > { %830 = vst [vmem:[%s3003_s24 + $0x220] sm:$0xff] %v829_v4  ;;  %v835_v7 = vld [vmem:[%s2998_s23 + $0x3b8] sm:$0xff]  ;;  %832 = vst [vmem:[%s3003_s24 + $0x228] sm:$0xff] %v831_v5  ;;  %v837_v8 = vld [vmem:[%s2998_s23 + $0x480] sm:$0xff] }
  0x39   : > { %834 = vst [vmem:[%s3003_s24 + $0x230] sm:$0xff] %v833_v6  ;;  %836 = vst [vmem:[%s3003_s24 + $0x238] sm:$0xff] %v835_v7  ;;  %v839_v9 = vld [vmem:[%s2998_s23 + $0x488] sm:$0xff]  ;;  %v841_v10 = vld [vmem:[%s2998_s23 + $0x490] sm:$0xff] }
  0x3a   : > { %838 = vst [vmem:[%s3003_s24 + $0x240] sm:$0xff] %v837_v8  ;;  %840 = vst [vmem:[%s3003_s24 + $0x248] sm:$0xff] %v839_v9  ;;  %v843_v11 = vld [vmem:[%s2998_s23 + $0x498] sm:$0xff]  ;;  %v845_v12 = vld [vmem:[%s2998_s23 + $0x4a0] sm:$0xff] }
  0x3b   : > { %842 = vst [vmem:[%s3003_s24 + $0x250] sm:$0xff] %v841_v10  ;;  %v847_v13 = vld [vmem:[%s2998_s23 + $0x4a8] sm:$0xff]  ;;  %844 = vst [vmem:[%s3003_s24 + $0x258] sm:$0xff] %v843_v11  ;;  %v849_v14 = vld [vmem:[%s2998_s23 + $0x4b0] sm:$0xff] }
  0x3c   : > { %846 = vst [vmem:[%s3003_s24 + $0x260] sm:$0xff] %v845_v12  ;;  %848 = vst [vmem:[%s3003_s24 + $0x268] sm:$0xff] %v847_v13  ;;  %v851_v15 = vld [vmem:[%s2998_s23 + $0x4b8] sm:$0xff]  ;;  %v853_v16 = vld [vmem:[%s2998_s23 + $0x4c0] sm:$0xff] }
  0x3d   : > { %850 = vst [vmem:[%s3003_s24 + $0x270] sm:$0xff] %v849_v14  ;;  %852 = vst [vmem:[%s3003_s24 + $0x278] sm:$0xff] %v851_v15  ;;  %v855_v17 = vld [vmem:[%s2998_s23 + $0x4c8] sm:$0xff]  ;;  %v857_v18 = vld [vmem:[%s2998_s23 + $0x4d0] sm:$0xff] }
  0x3e   : > { %854 = vst [vmem:[%s3003_s24 + $0x280] sm:$0xff] %v853_v16  ;;  %v859_v19 = vld [vmem:[%s2998_s23 + $0x4d8] sm:$0xff]  ;;  %856 = vst [vmem:[%s3003_s24 + $0x288] sm:$0xff] %v855_v17  ;;  %v861_v20 = vld [vmem:[%s2998_s23 + $0x4e0] sm:$0xff] }
  0x3f   : > { %858 = vst [vmem:[%s3003_s24 + $0x290] sm:$0xff] %v857_v18  ;;  %860 = vst [vmem:[%s3003_s24 + $0x298] sm:$0xff] %v859_v19  ;;  %v863_v21 = vld [vmem:[%s2998_s23 + $0x4e8] sm:$0xff]  ;;  %v865_v22 = vld [vmem:[%s2998_s23 + $0x4f0] sm:$0xff] }
  0x40   : > { %862 = vst [vmem:[%s3003_s24 + $0x2a0] sm:$0xff] %v861_v20  ;;  %864 = vst [vmem:[%s3003_s24 + $0x2a8] sm:$0xff] %v863_v21  ;;  %v867_v23 = vld [vmem:[%s2998_s23 + $0x4f8] sm:$0xff]  ;;  %v869_v24 = vld [vmem:[%s2998_s23 + $0x500] sm:$0xff] }
  0x41   : > { %866 = vst [vmem:[%s3003_s24 + $0x2b0] sm:$0xff] %v865_v22  ;;  %v871_v25 = vld [vmem:[%s2998_s23 + $0x508] sm:$0xff]  ;;  %868 = vst [vmem:[%s3003_s24 + $0x2b8] sm:$0xff] %v867_v23  ;;  %v873_v26 = vld [vmem:[%s2998_s23 + $0x510] sm:$0xff] }
  0x42   : > { %870 = vst [vmem:[%s3003_s24 + $0x2c0] sm:$0xff] %v869_v24  ;;  %872 = vst [vmem:[%s3003_s24 + $0x2c8] sm:$0xff] %v871_v25  ;;  %v875_v27 = vld [vmem:[%s2998_s23 + $0x518] sm:$0xff]  ;;  %v877_v28 = vld [vmem:[%s2998_s23 + $0x520] sm:$0xff] }
  0x43   : > { %874 = vst [vmem:[%s3003_s24 + $0x2d0] sm:$0xff] %v873_v26  ;;  %876 = vst [vmem:[%s3003_s24 + $0x2d8] sm:$0xff] %v875_v27  ;;  %v879_v29 = vld [vmem:[%s2998_s23 + $0x528] sm:$0xff]  ;;  %v881_v30 = vld [vmem:[%s2998_s23 + $0x530] sm:$0xff] }
  0x44   : > { %878 = vst [vmem:[%s3003_s24 + $0x2e0] sm:$0xff] %v877_v28  ;;  %v883_v31 = vld [vmem:[%s2998_s23 + $0x538] sm:$0xff]  ;;  %880 = vst [vmem:[%s3003_s24 + $0x2e8] sm:$0xff] %v879_v29  ;;  %v885_v32 = vld [vmem:[%s2998_s23 + $0x600] sm:$0xff] }
  0x45   : > { %882 = vst [vmem:[%s3003_s24 + $0x2f0] sm:$0xff] %v881_v30  ;;  %884 = vst [vmem:[%s3003_s24 + $0x2f8] sm:$0xff] %v883_v31  ;;  %v887_v33 = vld [vmem:[%s2998_s23 + $0x608] sm:$0xff]  ;;  %v889_v34 = vld [vmem:[%s2998_s23 + $0x610] sm:$0xff] }
  0x46   : > { %886 = vst [vmem:[%s3003_s24 + $0x300] sm:$0xff] %v885_v32  ;;  %888 = vst [vmem:[%s3003_s24 + $0x308] sm:$0xff] %v887_v33  ;;  %v891_v35 = vld [vmem:[%s2998_s23 + $0x618] sm:$0xff]  ;;  %v893_v36 = vld [vmem:[%s2998_s23 + $0x620] sm:$0xff] }
  0x47   : > { %890 = vst [vmem:[%s3003_s24 + $0x310] sm:$0xff] %v889_v34  ;;  %v895_v37 = vld [vmem:[%s2998_s23 + $0x628] sm:$0xff]  ;;  %892 = vst [vmem:[%s3003_s24 + $0x318] sm:$0xff] %v891_v35  ;;  %v897_v38 = vld [vmem:[%s2998_s23 + $0x630] sm:$0xff] }
  0x48   : > { %894 = vst [vmem:[%s3003_s24 + $0x320] sm:$0xff] %v893_v36  ;;  %896 = vst [vmem:[%s3003_s24 + $0x328] sm:$0xff] %v895_v37  ;;  %v899_v39 = vld [vmem:[%s2998_s23 + $0x638] sm:$0xff]  ;;  %v901_v40 = vld [vmem:[%s2998_s23 + $0x640] sm:$0xff] }
  0x49   : > { %898 = vst [vmem:[%s3003_s24 + $0x330] sm:$0xff] %v897_v38  ;;  %900 = vst [vmem:[%s3003_s24 + $0x338] sm:$0xff] %v899_v39  ;;  %v903_v41 = vld [vmem:[%s2998_s23 + $0x648] sm:$0xff]  ;;  %v905_v42 = vld [vmem:[%s2998_s23 + $0x650] sm:$0xff] }
  0x4a   : > { %902 = vst [vmem:[%s3003_s24 + $0x340] sm:$0xff] %v901_v40  ;;  %v907_v43 = vld [vmem:[%s2998_s23 + $0x658] sm:$0xff]  ;;  %904 = vst [vmem:[%s3003_s24 + $0x348] sm:$0xff] %v903_v41  ;;  %v909_v44 = vld [vmem:[%s2998_s23 + $0x660] sm:$0xff] }
  0x4b   : > { %906 = vst [vmem:[%s3003_s24 + $0x350] sm:$0xff] %v905_v42  ;;  %908 = vst [vmem:[%s3003_s24 + $0x358] sm:$0xff] %v907_v43  ;;  %v911_v45 = vld [vmem:[%s2998_s23 + $0x668] sm:$0xff]  ;;  %v913_v46 = vld [vmem:[%s2998_s23 + $0x670] sm:$0xff] }
  0x4c   : > { %910 = vst [vmem:[%s3003_s24 + $0x360] sm:$0xff] %v909_v44  ;;  %912 = vst [vmem:[%s3003_s24 + $0x368] sm:$0xff] %v911_v45  ;;  %v915_v47 = vld [vmem:[%s2998_s23 + $0x678] sm:$0xff]  ;;  %v917_v48 = vld [vmem:[%s2998_s23 + $0x680] sm:$0xff] }
  0x4d   : > { %914 = vst [vmem:[%s3003_s24 + $0x370] sm:$0xff] %v913_v46  ;;  %v919_v49 = vld [vmem:[%s2998_s23 + $0x688] sm:$0xff]  ;;  %916 = vst [vmem:[%s3003_s24 + $0x378] sm:$0xff] %v915_v47  ;;  %v921_v50 = vld [vmem:[%s2998_s23 + $0x690] sm:$0xff] }
  0x4e   : > { %918 = vst [vmem:[%s3003_s24 + $0x380] sm:$0xff] %v917_v48  ;;  %920 = vst [vmem:[%s3003_s24 + $0x388] sm:$0xff] %v919_v49  ;;  %v923_v51 = vld [vmem:[%s2998_s23 + $0x698] sm:$0xff]  ;;  %v925_v52 = vld [vmem:[%s2998_s23 + $0x6a0] sm:$0xff] }
  0x4f   : > { %922 = vst [vmem:[%s3003_s24 + $0x390] sm:$0xff] %v921_v50  ;;  %924 = vst [vmem:[%s3003_s24 + $0x398] sm:$0xff] %v923_v51  ;;  %v927_v53 = vld [vmem:[%s2998_s23 + $0x6a8] sm:$0xff]  ;;  %v929_v54 = vld [vmem:[%s2998_s23 + $0x6b0] sm:$0xff] }
  0x50   : > { %926 = vst [vmem:[%s3003_s24 + $0x3a0] sm:$0xff] %v925_v52  ;;  %v931_v55 = vld [vmem:[%s2998_s23 + $0x6b8] sm:$0xff]  ;;  %928 = vst [vmem:[%s3003_s24 + $0x3a8] sm:$0xff] %v927_v53  ;;  %v933_v56 = vld [vmem:[%s2998_s23 + $0x780] sm:$0xff] }
  0x51   : > { %930 = vst [vmem:[%s3003_s24 + $0x3b0] sm:$0xff] %v929_v54  ;;  %932 = vst [vmem:[%s3003_s24 + $0x3b8] sm:$0xff] %v931_v55  ;;  %v935_v57 = vld [vmem:[%s2998_s23 + $0x788] sm:$0xff]  ;;  %v937_v58 = vld [vmem:[%s2998_s23 + $0x790] sm:$0xff] }
  0x52   : > { %934 = vst [vmem:[%s3003_s24 + $0x3c0] sm:$0xff] %v933_v56  ;;  %936 = vst [vmem:[%s3003_s24 + $0x3c8] sm:$0xff] %v935_v57  ;;  %v939_v59 = vld [vmem:[%s2998_s23 + $0x798] sm:$0xff]  ;;  %v941_v60 = vld [vmem:[%s2998_s23 + $0x7a0] sm:$0xff] }
  0x53   : > { %938 = vst [vmem:[%s3003_s24 + $0x3d0] sm:$0xff] %v937_v58  ;;  %v943_v61 = vld [vmem:[%s2998_s23 + $0x7a8] sm:$0xff]  ;;  %940 = vst [vmem:[%s3003_s24 + $0x3d8] sm:$0xff] %v939_v59  ;;  %v945_v62 = vld [vmem:[%s2998_s23 + $0x7b0] sm:$0xff] }
  0x54   : > { %942 = vst [vmem:[%s3003_s24 + $0x3e0] sm:$0xff] %v941_v60  ;;  %944 = vst [vmem:[%s3003_s24 + $0x3e8] sm:$0xff] %v943_v61  ;;  %v947_v63 = vld [vmem:[%s2998_s23 + $0x7b8] sm:$0xff]  ;;  %v949_v0 = vld [vmem:[%s2998_s23 + $0x7c0] sm:$0xff] }
  0x55   : > { %946 = vst [vmem:[%s3003_s24 + $0x3f0] sm:$0xff] %v945_v62  ;;  %948 = vst [vmem:[%s3003_s24 + $0x3f8] sm:$0xff] %v947_v63  ;;  %v951_v1 = vld [vmem:[%s2998_s23 + $0x7c8] sm:$0xff]  ;;  %v953_v2 = vld [vmem:[%s2998_s23 + $0x7d0] sm:$0xff] }
  0x56   : > { %950 = vst [vmem:[%s3003_s24 + $0x400] sm:$0xff] %v949_v0  ;;  %v955_v3 = vld [vmem:[%s2998_s23 + $0x7d8] sm:$0xff]  ;;  %952 = vst [vmem:[%s3003_s24 + $0x408] sm:$0xff] %v951_v1  ;;  %v957_v4 = vld [vmem:[%s2998_s23 + $0x7e0] sm:$0xff] }
  0x57   : > { %954 = vst [vmem:[%s3003_s24 + $0x410] sm:$0xff] %v953_v2  ;;  %956 = vst [vmem:[%s3003_s24 + $0x418] sm:$0xff] %v955_v3  ;;  %v959_v5 = vld [vmem:[%s2998_s23 + $0x7e8] sm:$0xff]  ;;  %v961_v6 = vld [vmem:[%s2998_s23 + $0x7f0] sm:$0xff] }
  0x58   : > { %958 = vst [vmem:[%s3003_s24 + $0x420] sm:$0xff] %v957_v4  ;;  %960 = vst [vmem:[%s3003_s24 + $0x428] sm:$0xff] %v959_v5  ;;  %v963_v7 = vld [vmem:[%s2998_s23 + $0x7f8] sm:$0xff]  ;;  %v965_v8 = vld [vmem:[%s2998_s23 + $0x800] sm:$0xff] }
  0x59   : > { %962 = vst [vmem:[%s3003_s24 + $0x430] sm:$0xff] %v961_v6  ;;  %v967_v9 = vld [vmem:[%s2998_s23 + $0x808] sm:$0xff]  ;;  %964 = vst [vmem:[%s3003_s24 + $0x438] sm:$0xff] %v963_v7  ;;  %v969_v10 = vld [vmem:[%s2998_s23 + $0x810] sm:$0xff] }
  0x5a   : > { %966 = vst [vmem:[%s3003_s24 + $0x440] sm:$0xff] %v965_v8  ;;  %968 = vst [vmem:[%s3003_s24 + $0x448] sm:$0xff] %v967_v9  ;;  %v971_v11 = vld [vmem:[%s2998_s23 + $0x818] sm:$0xff]  ;;  %v973_v12 = vld [vmem:[%s2998_s23 + $0x820] sm:$0xff] }
  0x5b   : > { %970 = vst [vmem:[%s3003_s24 + $0x450] sm:$0xff] %v969_v10  ;;  %972 = vst [vmem:[%s3003_s24 + $0x458] sm:$0xff] %v971_v11  ;;  %v975_v13 = vld [vmem:[%s2998_s23 + $0x828] sm:$0xff]  ;;  %v977_v14 = vld [vmem:[%s2998_s23 + $0x830] sm:$0xff] }
  0x5c   : > { %974 = vst [vmem:[%s3003_s24 + $0x460] sm:$0xff] %v973_v12  ;;  %v979_v15 = vld [vmem:[%s2998_s23 + $0x838] sm:$0xff]  ;;  %976 = vst [vmem:[%s3003_s24 + $0x468] sm:$0xff] %v975_v13  ;;  %v981_v16 = vld [vmem:[%s2998_s23 + $0x900] sm:$0xff] }
  0x5d   : > { %978 = vst [vmem:[%s3003_s24 + $0x470] sm:$0xff] %v977_v14  ;;  %980 = vst [vmem:[%s3003_s24 + $0x478] sm:$0xff] %v979_v15  ;;  %v983_v17 = vld [vmem:[%s2998_s23 + $0x908] sm:$0xff]  ;;  %v985_v18 = vld [vmem:[%s2998_s23 + $0x910] sm:$0xff] }
  0x5e   : > { %982 = vst [vmem:[%s3003_s24 + $0x480] sm:$0xff] %v981_v16  ;;  %984 = vst [vmem:[%s3003_s24 + $0x488] sm:$0xff] %v983_v17  ;;  %v987_v19 = vld [vmem:[%s2998_s23 + $0x918] sm:$0xff]  ;;  %v989_v20 = vld [vmem:[%s2998_s23 + $0x920] sm:$0xff] }
  0x5f   : > { %986 = vst [vmem:[%s3003_s24 + $0x490] sm:$0xff] %v985_v18  ;;  %v991_v21 = vld [vmem:[%s2998_s23 + $0x928] sm:$0xff]  ;;  %988 = vst [vmem:[%s3003_s24 + $0x498] sm:$0xff] %v987_v19  ;;  %v993_v22 = vld [vmem:[%s2998_s23 + $0x930] sm:$0xff] }
  0x60   : > { %990 = vst [vmem:[%s3003_s24 + $0x4a0] sm:$0xff] %v989_v20  ;;  %992 = vst [vmem:[%s3003_s24 + $0x4a8] sm:$0xff] %v991_v21  ;;  %v995_v23 = vld [vmem:[%s2998_s23 + $0x938] sm:$0xff]  ;;  %v997_v24 = vld [vmem:[%s2998_s23 + $0x940] sm:$0xff] }
  0x61   : > { %994 = vst [vmem:[%s3003_s24 + $0x4b0] sm:$0xff] %v993_v22  ;;  %996 = vst [vmem:[%s3003_s24 + $0x4b8] sm:$0xff] %v995_v23  ;;  %v999_v25 = vld [vmem:[%s2998_s23 + $0x948] sm:$0xff]  ;;  %v1001_v26 = vld [vmem:[%s2998_s23 + $0x950] sm:$0xff] }
  0x62   : > { %998 = vst [vmem:[%s3003_s24 + $0x4c0] sm:$0xff] %v997_v24  ;;  %v1003_v27 = vld [vmem:[%s2998_s23 + $0x958] sm:$0xff]  ;;  %1000 = vst [vmem:[%s3003_s24 + $0x4c8] sm:$0xff] %v999_v25  ;;  %v1005_v28 = vld [vmem:[%s2998_s23 + $0x960] sm:$0xff] }
  0x63   : > { %1002 = vst [vmem:[%s3003_s24 + $0x4d0] sm:$0xff] %v1001_v26  ;;  %1004 = vst [vmem:[%s3003_s24 + $0x4d8] sm:$0xff] %v1003_v27  ;;  %v1007_v29 = vld [vmem:[%s2998_s23 + $0x968] sm:$0xff]  ;;  %v1009_v30 = vld [vmem:[%s2998_s23 + $0x970] sm:$0xff] }
  0x64   : > { %1006 = vst [vmem:[%s3003_s24 + $0x4e0] sm:$0xff] %v1005_v28  ;;  %1008 = vst [vmem:[%s3003_s24 + $0x4e8] sm:$0xff] %v1007_v29  ;;  %v1011_v31 = vld [vmem:[%s2998_s23 + $0x978] sm:$0xff]  ;;  %v1013_v32 = vld [vmem:[%s2998_s23 + $0x980] sm:$0xff] }
  0x65   : > { %1010 = vst [vmem:[%s3003_s24 + $0x4f0] sm:$0xff] %v1009_v30  ;;  %v1015_v33 = vld [vmem:[%s2998_s23 + $0x988] sm:$0xff]  ;;  %1012 = vst [vmem:[%s3003_s24 + $0x4f8] sm:$0xff] %v1011_v31  ;;  %v1017_v34 = vld [vmem:[%s2998_s23 + $0x990] sm:$0xff] }
  0x66   : > { %1014 = vst [vmem:[%s3003_s24 + $0x500] sm:$0xff] %v1013_v32  ;;  %1016 = vst [vmem:[%s3003_s24 + $0x508] sm:$0xff] %v1015_v33  ;;  %v1019_v35 = vld [vmem:[%s2998_s23 + $0x998] sm:$0xff]  ;;  %v1021_v36 = vld [vmem:[%s2998_s23 + $0x9a0] sm:$0xff] }
  0x67   : > { %1018 = vst [vmem:[%s3003_s24 + $0x510] sm:$0xff] %v1017_v34  ;;  %1020 = vst [vmem:[%s3003_s24 + $0x518] sm:$0xff] %v1019_v35  ;;  %v1023_v37 = vld [vmem:[%s2998_s23 + $0x9a8] sm:$0xff]  ;;  %v1025_v38 = vld [vmem:[%s2998_s23 + $0x9b0] sm:$0xff] }
  0x68   : > { %1022 = vst [vmem:[%s3003_s24 + $0x520] sm:$0xff] %v1021_v36  ;;  %v1027_v39 = vld [vmem:[%s2998_s23 + $0x9b8] sm:$0xff]  ;;  %1024 = vst [vmem:[%s3003_s24 + $0x528] sm:$0xff] %v1023_v37  ;;  %v1029_v40 = vld [vmem:[%s2998_s23 + $0xa80] sm:$0xff] }
  0x69   : > { %1026 = vst [vmem:[%s3003_s24 + $0x530] sm:$0xff] %v1025_v38  ;;  %1028 = vst [vmem:[%s3003_s24 + $0x538] sm:$0xff] %v1027_v39  ;;  %v1031_v41 = vld [vmem:[%s2998_s23 + $0xa88] sm:$0xff]  ;;  %v1033_v42 = vld [vmem:[%s2998_s23 + $0xa90] sm:$0xff] }
  0x6a   : > { %1030 = vst [vmem:[%s3003_s24 + $0x540] sm:$0xff] %v1029_v40  ;;  %1032 = vst [vmem:[%s3003_s24 + $0x548] sm:$0xff] %v1031_v41  ;;  %v1035_v43 = vld [vmem:[%s2998_s23 + $0xa98] sm:$0xff]  ;;  %v1037_v44 = vld [vmem:[%s2998_s23 + $0xaa0] sm:$0xff] }
  0x6b   : > { %1034 = vst [vmem:[%s3003_s24 + $0x550] sm:$0xff] %v1033_v42  ;;  %v1039_v45 = vld [vmem:[%s2998_s23 + $0xaa8] sm:$0xff]  ;;  %1036 = vst [vmem:[%s3003_s24 + $0x558] sm:$0xff] %v1035_v43  ;;  %v1041_v46 = vld [vmem:[%s2998_s23 + $0xab0] sm:$0xff] }
  0x6c   : > { %1038 = vst [vmem:[%s3003_s24 + $0x560] sm:$0xff] %v1037_v44  ;;  %1040 = vst [vmem:[%s3003_s24 + $0x568] sm:$0xff] %v1039_v45  ;;  %v1043_v47 = vld [vmem:[%s2998_s23 + $0xab8] sm:$0xff]  ;;  %v1045_v48 = vld [vmem:[%s2998_s23 + $0xac0] sm:$0xff] }
  0x6d   : > { %1042 = vst [vmem:[%s3003_s24 + $0x570] sm:$0xff] %v1041_v46  ;;  %1044 = vst [vmem:[%s3003_s24 + $0x578] sm:$0xff] %v1043_v47  ;;  %v1047_v49 = vld [vmem:[%s2998_s23 + $0xac8] sm:$0xff]  ;;  %v1049_v50 = vld [vmem:[%s2998_s23 + $0xad0] sm:$0xff] }
  0x6e   : > { %1046 = vst [vmem:[%s3003_s24 + $0x580] sm:$0xff] %v1045_v48  ;;  %v1051_v51 = vld [vmem:[%s2998_s23 + $0xad8] sm:$0xff]  ;;  %1048 = vst [vmem:[%s3003_s24 + $0x588] sm:$0xff] %v1047_v49  ;;  %v1053_v52 = vld [vmem:[%s2998_s23 + $0xae0] sm:$0xff] }
  0x6f   : > { %1050 = vst [vmem:[%s3003_s24 + $0x590] sm:$0xff] %v1049_v50  ;;  %1052 = vst [vmem:[%s3003_s24 + $0x598] sm:$0xff] %v1051_v51  ;;  %v1055_v53 = vld [vmem:[%s2998_s23 + $0xae8] sm:$0xff]  ;;  %v1057_v54 = vld [vmem:[%s2998_s23 + $0xaf0] sm:$0xff] }
  0x70   : > { %1054 = vst [vmem:[%s3003_s24 + $0x5a0] sm:$0xff] %v1053_v52  ;;  %1056 = vst [vmem:[%s3003_s24 + $0x5a8] sm:$0xff] %v1055_v53  ;;  %v1059_v55 = vld [vmem:[%s2998_s23 + $0xaf8] sm:$0xff]  ;;  %v1061_v56 = vld [vmem:[%s2998_s23 + $0xb00] sm:$0xff] }
  0x71   : > { %1058 = vst [vmem:[%s3003_s24 + $0x5b0] sm:$0xff] %v1057_v54  ;;  %v1063_v57 = vld [vmem:[%s2998_s23 + $0xb08] sm:$0xff]  ;;  %1060 = vst [vmem:[%s3003_s24 + $0x5b8] sm:$0xff] %v1059_v55  ;;  %v1065_v58 = vld [vmem:[%s2998_s23 + $0xb10] sm:$0xff] }
  0x72   : > { %1062 = vst [vmem:[%s3003_s24 + $0x5c0] sm:$0xff] %v1061_v56  ;;  %1064 = vst [vmem:[%s3003_s24 + $0x5c8] sm:$0xff] %v1063_v57  ;;  %v1067_v59 = vld [vmem:[%s2998_s23 + $0xb18] sm:$0xff]  ;;  %v1069_v60 = vld [vmem:[%s2998_s23 + $0xb20] sm:$0xff] }
  0x73   : > { %1066 = vst [vmem:[%s3003_s24 + $0x5d0] sm:$0xff] %v1065_v58  ;;  %1068 = vst [vmem:[%s3003_s24 + $0x5d8] sm:$0xff] %v1067_v59  ;;  %v1071_v61 = vld [vmem:[%s2998_s23 + $0xb28] sm:$0xff]  ;;  %v1073_v62 = vld [vmem:[%s2998_s23 + $0xb30] sm:$0xff] }
  0x74   : > { %1070 = vst [vmem:[%s3003_s24 + $0x5e0] sm:$0xff] %v1069_v60  ;;  %v1075_v63 = vld [vmem:[%s2998_s23 + $0xb38] sm:$0xff]  ;;  %1072 = vst [vmem:[%s3003_s24 + $0x5e8] sm:$0xff] %v1071_v61  ;;  %v1077_v0 = vld [vmem:[%s2998_s23 + $0xc00] sm:$0xff] }
  0x75   : > { %1074 = vst [vmem:[%s3003_s24 + $0x5f0] sm:$0xff] %v1073_v62  ;;  %1076 = vst [vmem:[%s3003_s24 + $0x5f8] sm:$0xff] %v1075_v63  ;;  %v1079_v1 = vld [vmem:[%s2998_s23 + $0xc08] sm:$0xff]  ;;  %v1081_v2 = vld [vmem:[%s2998_s23 + $0xc10] sm:$0xff] }
  0x76   : > { %1078 = vst [vmem:[%s3003_s24 + $0x600] sm:$0xff] %v1077_v0  ;;  %1080 = vst [vmem:[%s3003_s24 + $0x608] sm:$0xff] %v1079_v1  ;;  %v1083_v3 = vld [vmem:[%s2998_s23 + $0xc18] sm:$0xff]  ;;  %v1085_v4 = vld [vmem:[%s2998_s23 + $0xc20] sm:$0xff] }
  0x77   : > { %1082 = vst [vmem:[%s3003_s24 + $0x610] sm:$0xff] %v1081_v2  ;;  %v1087_v5 = vld [vmem:[%s2998_s23 + $0xc28] sm:$0xff]  ;;  %1084 = vst [vmem:[%s3003_s24 + $0x618] sm:$0xff] %v1083_v3  ;;  %v1089_v6 = vld [vmem:[%s2998_s23 + $0xc30] sm:$0xff] }
  0x78   : > { %1086 = vst [vmem:[%s3003_s24 + $0x620] sm:$0xff] %v1085_v4  ;;  %1088 = vst [vmem:[%s3003_s24 + $0x628] sm:$0xff] %v1087_v5  ;;  %v1091_v7 = vld [vmem:[%s2998_s23 + $0xc38] sm:$0xff]  ;;  %v1093_v8 = vld [vmem:[%s2998_s23 + $0xc40] sm:$0xff] }
  0x79   : > { %1090 = vst [vmem:[%s3003_s24 + $0x630] sm:$0xff] %v1089_v6  ;;  %1092 = vst [vmem:[%s3003_s24 + $0x638] sm:$0xff] %v1091_v7  ;;  %v1095_v9 = vld [vmem:[%s2998_s23 + $0xc48] sm:$0xff]  ;;  %v1097_v10 = vld [vmem:[%s2998_s23 + $0xc50] sm:$0xff] }
  0x7a   : > { %1094 = vst [vmem:[%s3003_s24 + $0x640] sm:$0xff] %v1093_v8  ;;  %v1099_v11 = vld [vmem:[%s2998_s23 + $0xc58] sm:$0xff]  ;;  %1096 = vst [vmem:[%s3003_s24 + $0x648] sm:$0xff] %v1095_v9  ;;  %v1101_v12 = vld [vmem:[%s2998_s23 + $0xc60] sm:$0xff] }
  0x7b   : > { %1098 = vst [vmem:[%s3003_s24 + $0x650] sm:$0xff] %v1097_v10  ;;  %1100 = vst [vmem:[%s3003_s24 + $0x658] sm:$0xff] %v1099_v11  ;;  %v1103_v13 = vld [vmem:[%s2998_s23 + $0xc68] sm:$0xff]  ;;  %v1105_v14 = vld [vmem:[%s2998_s23 + $0xc70] sm:$0xff] }
  0x7c   : > { %1102 = vst [vmem:[%s3003_s24 + $0x660] sm:$0xff] %v1101_v12  ;;  %1104 = vst [vmem:[%s3003_s24 + $0x668] sm:$0xff] %v1103_v13  ;;  %v1107_v15 = vld [vmem:[%s2998_s23 + $0xc78] sm:$0xff]  ;;  %v1109_v16 = vld [vmem:[%s2998_s23 + $0xc80] sm:$0xff] }
  0x7d   : > { %1106 = vst [vmem:[%s3003_s24 + $0x670] sm:$0xff] %v1105_v14  ;;  %v1111_v17 = vld [vmem:[%s2998_s23 + $0xc88] sm:$0xff]  ;;  %1108 = vst [vmem:[%s3003_s24 + $0x678] sm:$0xff] %v1107_v15  ;;  %v1113_v18 = vld [vmem:[%s2998_s23 + $0xc90] sm:$0xff] }
  0x7e   : > { %1110 = vst [vmem:[%s3003_s24 + $0x680] sm:$0xff] %v1109_v16  ;;  %1112 = vst [vmem:[%s3003_s24 + $0x688] sm:$0xff] %v1111_v17  ;;  %v1115_v19 = vld [vmem:[%s2998_s23 + $0xc98] sm:$0xff]  ;;  %v1117_v20 = vld [vmem:[%s2998_s23 + $0xca0] sm:$0xff] }
  0x7f   : > { %1114 = vst [vmem:[%s3003_s24 + $0x690] sm:$0xff] %v1113_v18  ;;  %1116 = vst [vmem:[%s3003_s24 + $0x698] sm:$0xff] %v1115_v19  ;;  %v1119_v21 = vld [vmem:[%s2998_s23 + $0xca8] sm:$0xff]  ;;  %v1121_v22 = vld [vmem:[%s2998_s23 + $0xcb0] sm:$0xff] }
  0x80   : > { %1118 = vst [vmem:[%s3003_s24 + $0x6a0] sm:$0xff] %v1117_v20  ;;  %v1123_v23 = vld [vmem:[%s2998_s23 + $0xcb8] sm:$0xff]  ;;  %1120 = vst [vmem:[%s3003_s24 + $0x6a8] sm:$0xff] %v1119_v21  ;;  %v1125_v24 = vld [vmem:[%s2998_s23 + $0xd80] sm:$0xff] }
  0x81   : > { %1122 = vst [vmem:[%s3003_s24 + $0x6b0] sm:$0xff] %v1121_v22  ;;  %1124 = vst [vmem:[%s3003_s24 + $0x6b8] sm:$0xff] %v1123_v23  ;;  %v1127_v25 = vld [vmem:[%s2998_s23 + $0xd88] sm:$0xff]  ;;  %v1129_v26 = vld [vmem:[%s2998_s23 + $0xd90] sm:$0xff] }
  0x82   : > { %1126 = vst [vmem:[%s3003_s24 + $0x6c0] sm:$0xff] %v1125_v24  ;;  %1128 = vst [vmem:[%s3003_s24 + $0x6c8] sm:$0xff] %v1127_v25  ;;  %v1131_v27 = vld [vmem:[%s2998_s23 + $0xd98] sm:$0xff]  ;;  %v1133_v28 = vld [vmem:[%s2998_s23 + $0xda0] sm:$0xff] }
  0x83   : > { %1130 = vst [vmem:[%s3003_s24 + $0x6d0] sm:$0xff] %v1129_v26  ;;  %v1135_v29 = vld [vmem:[%s2998_s23 + $0xda8] sm:$0xff]  ;;  %1132 = vst [vmem:[%s3003_s24 + $0x6d8] sm:$0xff] %v1131_v27  ;;  %v1137_v30 = vld [vmem:[%s2998_s23 + $0xdb0] sm:$0xff] }
  0x84   : > { %1134 = vst [vmem:[%s3003_s24 + $0x6e0] sm:$0xff] %v1133_v28  ;;  %1136 = vst [vmem:[%s3003_s24 + $0x6e8] sm:$0xff] %v1135_v29  ;;  %v1139_v31 = vld [vmem:[%s2998_s23 + $0xdb8] sm:$0xff]  ;;  %v1141_v32 = vld [vmem:[%s2998_s23 + $0xdc0] sm:$0xff] }
  0x85   : > { %1138 = vst [vmem:[%s3003_s24 + $0x6f0] sm:$0xff] %v1137_v30  ;;  %1140 = vst [vmem:[%s3003_s24 + $0x6f8] sm:$0xff] %v1139_v31  ;;  %v1143_v33 = vld [vmem:[%s2998_s23 + $0xdc8] sm:$0xff]  ;;  %v1145_v34 = vld [vmem:[%s2998_s23 + $0xdd0] sm:$0xff] }
  0x86   : > { %1142 = vst [vmem:[%s3003_s24 + $0x700] sm:$0xff] %v1141_v32  ;;  %v1147_v35 = vld [vmem:[%s2998_s23 + $0xdd8] sm:$0xff]  ;;  %1144 = vst [vmem:[%s3003_s24 + $0x708] sm:$0xff] %v1143_v33  ;;  %v1149_v36 = vld [vmem:[%s2998_s23 + $0xde0] sm:$0xff] }
  0x87   : > { %1146 = vst [vmem:[%s3003_s24 + $0x710] sm:$0xff] %v1145_v34  ;;  %1148 = vst [vmem:[%s3003_s24 + $0x718] sm:$0xff] %v1147_v35  ;;  %v1151_v37 = vld [vmem:[%s2998_s23 + $0xde8] sm:$0xff]  ;;  %v1153_v38 = vld [vmem:[%s2998_s23 + $0xdf0] sm:$0xff] }
  0x88   : > { %1150 = vst [vmem:[%s3003_s24 + $0x720] sm:$0xff] %v1149_v36  ;;  %1152 = vst [vmem:[%s3003_s24 + $0x728] sm:$0xff] %v1151_v37  ;;  %v1155_v39 = vld [vmem:[%s2998_s23 + $0xdf8] sm:$0xff]  ;;  %v1157_v40 = vld [vmem:[%s2998_s23 + $0xe00] sm:$0xff] }
  0x89   : > { %1154 = vst [vmem:[%s3003_s24 + $0x730] sm:$0xff] %v1153_v38  ;;  %v1159_v41 = vld [vmem:[%s2998_s23 + $0xe08] sm:$0xff]  ;;  %1156 = vst [vmem:[%s3003_s24 + $0x738] sm:$0xff] %v1155_v39  ;;  %v1161_v42 = vld [vmem:[%s2998_s23 + $0xe10] sm:$0xff] }
  0x8a   : > { %1158 = vst [vmem:[%s3003_s24 + $0x740] sm:$0xff] %v1157_v40  ;;  %1160 = vst [vmem:[%s3003_s24 + $0x748] sm:$0xff] %v1159_v41  ;;  %v1163_v43 = vld [vmem:[%s2998_s23 + $0xe18] sm:$0xff]  ;;  %v1165_v44 = vld [vmem:[%s2998_s23 + $0xe20] sm:$0xff] }
  0x8b   : > { %1162 = vst [vmem:[%s3003_s24 + $0x750] sm:$0xff] %v1161_v42  ;;  %1164 = vst [vmem:[%s3003_s24 + $0x758] sm:$0xff] %v1163_v43  ;;  %v1167_v45 = vld [vmem:[%s2998_s23 + $0xe28] sm:$0xff]  ;;  %v1169_v46 = vld [vmem:[%s2998_s23 + $0xe30] sm:$0xff] }
  0x8c   : > { %1166 = vst [vmem:[%s3003_s24 + $0x760] sm:$0xff] %v1165_v44  ;;  %v1171_v47 = vld [vmem:[%s2998_s23 + $0xe38] sm:$0xff]  ;;  %1168 = vst [vmem:[%s3003_s24 + $0x768] sm:$0xff] %v1167_v45  ;;  %v1173_v48 = vld [vmem:[%s2998_s23 + $0xf00] sm:$0xff] }
  0x8d   : > { %1170 = vst [vmem:[%s3003_s24 + $0x770] sm:$0xff] %v1169_v46  ;;  %1172 = vst [vmem:[%s3003_s24 + $0x778] sm:$0xff] %v1171_v47  ;;  %v1175_v49 = vld [vmem:[%s2998_s23 + $0xf08] sm:$0xff]  ;;  %v1177_v50 = vld [vmem:[%s2998_s23 + $0xf10] sm:$0xff] }
  0x8e   : > { %1174 = vst [vmem:[%s3003_s24 + $0x780] sm:$0xff] %v1173_v48  ;;  %1176 = vst [vmem:[%s3003_s24 + $0x788] sm:$0xff] %v1175_v49  ;;  %v1179_v51 = vld [vmem:[%s2998_s23 + $0xf18] sm:$0xff]  ;;  %v1181_v52 = vld [vmem:[%s2998_s23 + $0xf20] sm:$0xff] }
  0x8f   : > { %1178 = vst [vmem:[%s3003_s24 + $0x790] sm:$0xff] %v1177_v50  ;;  %v1183_v53 = vld [vmem:[%s2998_s23 + $0xf28] sm:$0xff]  ;;  %1180 = vst [vmem:[%s3003_s24 + $0x798] sm:$0xff] %v1179_v51  ;;  %v1185_v54 = vld [vmem:[%s2998_s23 + $0xf30] sm:$0xff] }
  0x90   : > { %1182 = vst [vmem:[%s3003_s24 + $0x7a0] sm:$0xff] %v1181_v52  ;;  %1184 = vst [vmem:[%s3003_s24 + $0x7a8] sm:$0xff] %v1183_v53  ;;  %v1187_v55 = vld [vmem:[%s2998_s23 + $0xf38] sm:$0xff]  ;;  %v1189_v56 = vld [vmem:[%s2998_s23 + $0xf40] sm:$0xff] }
  0x91   : > { %1186 = vst [vmem:[%s3003_s24 + $0x7b0] sm:$0xff] %v1185_v54  ;;  %1188 = vst [vmem:[%s3003_s24 + $0x7b8] sm:$0xff] %v1187_v55  ;;  %v1191_v57 = vld [vmem:[%s2998_s23 + $0xf48] sm:$0xff]  ;;  %v1193_v58 = vld [vmem:[%s2998_s23 + $0xf50] sm:$0xff] }
  0x92   : > { %1190 = vst [vmem:[%s3003_s24 + $0x7c0] sm:$0xff] %v1189_v56  ;;  %v1195_v59 = vld [vmem:[%s2998_s23 + $0xf58] sm:$0xff]  ;;  %1192 = vst [vmem:[%s3003_s24 + $0x7c8] sm:$0xff] %v1191_v57  ;;  %v1197_v60 = vld [vmem:[%s2998_s23 + $0xf60] sm:$0xff] }
  0x93   : > { %1194 = vst [vmem:[%s3003_s24 + $0x7d0] sm:$0xff] %v1193_v58  ;;  %1196 = vst [vmem:[%s3003_s24 + $0x7d8] sm:$0xff] %v1195_v59  ;;  %v1199_v61 = vld [vmem:[%s2998_s23 + $0xf68] sm:$0xff]  ;;  %v1201_v62 = vld [vmem:[%s2998_s23 + $0xf70] sm:$0xff] }
  0x94   : > { %1198 = vst [vmem:[%s3003_s24 + $0x7e0] sm:$0xff] %v1197_v60  ;;  %1200 = vst [vmem:[%s3003_s24 + $0x7e8] sm:$0xff] %v1199_v61  ;;  %v1203_v63 = vld [vmem:[%s2998_s23 + $0xf78] sm:$0xff]  ;;  %v1205_v0 = vld [vmem:[%s2998_s23 + $0xf80] sm:$0xff] }
  0x95   : > { %1202 = vst [vmem:[%s3003_s24 + $0x7f0] sm:$0xff] %v1201_v62  ;;  %v1207_v1 = vld [vmem:[%s2998_s23 + $0xf88] sm:$0xff]  ;;  %1204 = vst [vmem:[%s3003_s24 + $0x7f8] sm:$0xff] %v1203_v63  ;;  %v1209_v2 = vld [vmem:[%s2998_s23 + $0xf90] sm:$0xff] }
  0x96   : > { %1206 = vst [vmem:[%s3003_s24 + $0x800] sm:$0xff] %v1205_v0  ;;  %1208 = vst [vmem:[%s3003_s24 + $0x808] sm:$0xff] %v1207_v1  ;;  %v1211_v3 = vld [vmem:[%s2998_s23 + $0xf98] sm:$0xff]  ;;  %v1213_v4 = vld [vmem:[%s2998_s23 + $0xfa0] sm:$0xff] }
  0x97   : > { %1210 = vst [vmem:[%s3003_s24 + $0x810] sm:$0xff] %v1209_v2  ;;  %1212 = vst [vmem:[%s3003_s24 + $0x818] sm:$0xff] %v1211_v3  ;;  %v1215_v5 = vld [vmem:[%s2998_s23 + $0xfa8] sm:$0xff]  ;;  %v1217_v6 = vld [vmem:[%s2998_s23 + $0xfb0] sm:$0xff] }
  0x98   : > { %1214 = vst [vmem:[%s3003_s24 + $0x820] sm:$0xff] %v1213_v4  ;;  %v1219_v7 = vld [vmem:[%s2998_s23 + $0xfb8] sm:$0xff]  ;;  %1216 = vst [vmem:[%s3003_s24 + $0x828] sm:$0xff] %v1215_v5  ;;  %v1221_v8 = vld [vmem:[%s2998_s23 + $0x1080] sm:$0xff] }
  0x99   : > { %1218 = vst [vmem:[%s3003_s24 + $0x830] sm:$0xff] %v1217_v6  ;;  %1220 = vst [vmem:[%s3003_s24 + $0x838] sm:$0xff] %v1219_v7  ;;  %v1223_v9 = vld [vmem:[%s2998_s23 + $0x1088] sm:$0xff]  ;;  %v1225_v10 = vld [vmem:[%s2998_s23 + $0x1090] sm:$0xff] }
  0x9a   : > { %1222 = vst [vmem:[%s3003_s24 + $0x840] sm:$0xff] %v1221_v8  ;;  %1224 = vst [vmem:[%s3003_s24 + $0x848] sm:$0xff] %v1223_v9  ;;  %v1227_v11 = vld [vmem:[%s2998_s23 + $0x1098] sm:$0xff]  ;;  %v1229_v12 = vld [vmem:[%s2998_s23 + $0x10a0] sm:$0xff] }
  0x9b   : > { %1226 = vst [vmem:[%s3003_s24 + $0x850] sm:$0xff] %v1225_v10  ;;  %v1231_v13 = vld [vmem:[%s2998_s23 + $0x10a8] sm:$0xff]  ;;  %1228 = vst [vmem:[%s3003_s24 + $0x858] sm:$0xff] %v1227_v11  ;;  %v1233_v14 = vld [vmem:[%s2998_s23 + $0x10b0] sm:$0xff] }
  0x9c   : > { %1230 = vst [vmem:[%s3003_s24 + $0x860] sm:$0xff] %v1229_v12  ;;  %1232 = vst [vmem:[%s3003_s24 + $0x868] sm:$0xff] %v1231_v13  ;;  %v1235_v15 = vld [vmem:[%s2998_s23 + $0x10b8] sm:$0xff]  ;;  %v1237_v16 = vld [vmem:[%s2998_s23 + $0x10c0] sm:$0xff] }
  0x9d   : > { %1234 = vst [vmem:[%s3003_s24 + $0x870] sm:$0xff] %v1233_v14  ;;  %1236 = vst [vmem:[%s3003_s24 + $0x878] sm:$0xff] %v1235_v15  ;;  %v1239_v17 = vld [vmem:[%s2998_s23 + $0x10c8] sm:$0xff]  ;;  %v1241_v18 = vld [vmem:[%s2998_s23 + $0x10d0] sm:$0xff] }
  0x9e   : > { %1238 = vst [vmem:[%s3003_s24 + $0x880] sm:$0xff] %v1237_v16  ;;  %v1243_v19 = vld [vmem:[%s2998_s23 + $0x10d8] sm:$0xff]  ;;  %1240 = vst [vmem:[%s3003_s24 + $0x888] sm:$0xff] %v1239_v17  ;;  %v1245_v20 = vld [vmem:[%s2998_s23 + $0x10e0] sm:$0xff] }
  0x9f   : > { %1242 = vst [vmem:[%s3003_s24 + $0x890] sm:$0xff] %v1241_v18  ;;  %1244 = vst [vmem:[%s3003_s24 + $0x898] sm:$0xff] %v1243_v19  ;;  %v1247_v21 = vld [vmem:[%s2998_s23 + $0x10e8] sm:$0xff]  ;;  %v1249_v22 = vld [vmem:[%s2998_s23 + $0x10f0] sm:$0xff] }
  0xa0   : > { %1246 = vst [vmem:[%s3003_s24 + $0x8a0] sm:$0xff] %v1245_v20  ;;  %1248 = vst [vmem:[%s3003_s24 + $0x8a8] sm:$0xff] %v1247_v21  ;;  %v1251_v23 = vld [vmem:[%s2998_s23 + $0x10f8] sm:$0xff]  ;;  %v1253_v24 = vld [vmem:[%s2998_s23 + $0x1100] sm:$0xff] }
  0xa1   : > { %1250 = vst [vmem:[%s3003_s24 + $0x8b0] sm:$0xff] %v1249_v22  ;;  %v1255_v25 = vld [vmem:[%s2998_s23 + $0x1108] sm:$0xff]  ;;  %1252 = vst [vmem:[%s3003_s24 + $0x8b8] sm:$0xff] %v1251_v23  ;;  %v1257_v26 = vld [vmem:[%s2998_s23 + $0x1110] sm:$0xff] }
  0xa2   : > { %1254 = vst [vmem:[%s3003_s24 + $0x8c0] sm:$0xff] %v1253_v24  ;;  %1256 = vst [vmem:[%s3003_s24 + $0x8c8] sm:$0xff] %v1255_v25  ;;  %v1259_v27 = vld [vmem:[%s2998_s23 + $0x1118] sm:$0xff]  ;;  %v1261_v28 = vld [vmem:[%s2998_s23 + $0x1120] sm:$0xff] }
  0xa3   : > { %1258 = vst [vmem:[%s3003_s24 + $0x8d0] sm:$0xff] %v1257_v26  ;;  %1260 = vst [vmem:[%s3003_s24 + $0x8d8] sm:$0xff] %v1259_v27  ;;  %v1263_v29 = vld [vmem:[%s2998_s23 + $0x1128] sm:$0xff]  ;;  %v1265_v30 = vld [vmem:[%s2998_s23 + $0x1130] sm:$0xff] }
  0xa4   : > { %1262 = vst [vmem:[%s3003_s24 + $0x8e0] sm:$0xff] %v1261_v28  ;;  %v1267_v31 = vld [vmem:[%s2998_s23 + $0x1138] sm:$0xff]  ;;  %1264 = vst [vmem:[%s3003_s24 + $0x8e8] sm:$0xff] %v1263_v29 }
  0xa5   : > { %1266 = vst [vmem:[%s3003_s24 + $0x8f0] sm:$0xff] %v1265_v30  ;;  %1268 = vst [vmem:[%s3003_s24 + $0x8f8] sm:$0xff] %v1267_v31 }
  0xa6 PF: > { %p2552_p10 = scmp.ge.s32.totalorder %s2928_s9, 1  ;;  %p1273_p11 = scmp.lt.s32.totalorder %s2928_s9, 3 }
  0xa8   : > { %p1274_p12 = pnand %p2552_p10, %p1273_p11 }
  0xa9   : > { %s3581_s25 = sand.u32 (!%p1274_p12), 1, %s2920_s7   ;;  %s2930_s28 = smov (!%p1274_p12), 64  }
  0xaa   : > { %1277 = sbr.rel (%p1274_p12) target bundleno = 590 (0x24e), region = 58  ;;  %s2931_s14 = smov (!%p1274_p12), [#allocation3]  }
  0xab   : > { %s2822_s26 = smul.u32 (!%p1274_p12), 2304, %s3581_s25  ;;  %s2872_s18 = sshll.u32 (!%p1274_p12), %s2931_s14, 4  ;;  %s2873_s18 = int_to_ptr.vmem [resolvable:$false] %s2872_s18 }
  0xac   : > { %s2823_s29 = smul.u32 (!%p1274_p12), 1152, %s3581_s25  ;;  %s2874_s19 = scalar_lea.vmem (!%p1274_p12), %s2873_s18, 36864 }
  0xad   : > { %s3584_s27 = scalar_lea.vmem (!%p1274_p12), [#allocation2], %s2822_s26  ;;  %s2831_s2 = smul.u32 (!%p1274_p12), 18432, %s2547_s10 }
  0xae   : > { %s3709_s30 = scalar_lea.vmem (!%p1274_p12), [#allocation3], %s2823_s29  ;;  %s2466_s10 = scalar_lea.sflag (!%p1274_p12), [#allocation4], %s3581_s25 }
  0xaf   : > { %v2555_v32 = vld [vmem:[%s3584_s27 + $0xd0] sm:$0xff]  ;;  %v2553_v33 = vld [vmem:[%s3584_s27 + $0xc0] sm:$0xff]  ;;  %v2556_v34 = vld [vmem:[%s3584_s27 + $0xd8] sm:$0xff]  ;;  %vm1446_vm0 = vcmask 523264   ;;  %s2480_s3 = sshll.u32 %s3709_s30, 4  ;;  %s4311_s11 = scalar_lea.hbm %s4361_s1, %s2831_s2  ;;  %s4313_s3 = int_to_ptr.vmem [resolvable:$true] %s2480_s3 }
  0xb0   : > { %1378 = vrot.lane.b32.xlu1 %v2555_v32, %s2930_s28  ;;  %1374 = vrot.lane.b32.xlu0 %v2553_v33, %s2930_s28  ;;  %v2554_v35 = vld [vmem:[%s3584_s27 + $0xc8] sm:$0xff]  ;;  %v2557_v37 = vld [vmem:[%s3584_s27 + $0xe0] sm:$0xff]  ;;  %s2868_s13 = scalar_lea.vmem %s4313_s3, 18432  ;;  %p2875_p2 = scmp.lt.s32.totalorder %s4313_s3, %s2873_s18 }
  0xb1   : > { %v2558_v36 = vld [vmem:[%s3584_s27 + $0xe8] sm:$0xff]  ;;  %v2560_v38 = vld [vmem:[%s3584_s27 + $0xf8] sm:$0xff]  ;;  %v2559_v39 = vld [vmem:[%s3584_s27 + $0xf0] sm:$0xff]  ;;  %p2869_p13 = scmp.ne.s32.totalorder %s4313_s3, %s2868_s13  ;;  %p2876_p3 = scmp.lt.s32.totalorder %s2874_s19, %s2868_s13 }
  0xb2   : > { %v2562_v40 = vld [vmem:[%s3584_s27 + $0x108] sm:$0xff]  ;;  %v2561_v41 = vld [vmem:[%s3584_s27 + $0x100] sm:$0xff]  ;;  %v2564_v42 = vld [vmem:[%s3584_s27 + $0x118] sm:$0xff] }
  0xb3   : > { %v2563_v43 = vld [vmem:[%s3584_s27 + $0x110] sm:$0xff]  ;;  %v2566_v44 = vld [vmem:[%s3584_s27 + $0x128] sm:$0xff]  ;;  %v2565_v45 = vld [vmem:[%s3584_s27 + $0x120] sm:$0xff]  ;;  %p2870_p0 = pnand %p2869_p13, %p2982_p6  ;;  %p2877_p4 = por %p2876_p3, %p2875_p2 }
  0xb4   : > { %1380 = vrot.lane.b32.xlu1 %v2556_v34, %s2930_s28  ;;  %1376 = vrot.lane.b32.xlu0 %v2554_v35, %s2930_s28  ;;  %v2568_v46 = vld [vmem:[%s3584_s27 + $0x138] sm:$0xff]  ;;  %v2567_v47 = vld [vmem:[%s3584_s27 + $0x130] sm:$0xff] }
  0xb5   : > { %v2570_v48 = vld [vmem:[%s3584_s27 + $0x148] sm:$0xff]  ;;  %v2569_v49 = vld [vmem:[%s3584_s27 + $0x140] sm:$0xff]  ;;  %v2572_v50 = vld [vmem:[%s3584_s27 + $0x158] sm:$0xff]  ;;  %p2871_p1 = pneg %p2870_p0 }
  0xb6   : > { %v2571_v51 = vld [vmem:[%s3584_s27 + $0x150] sm:$0xff]  ;;  %v2574_v52 = vld [vmem:[%s3584_s27 + $0x168] sm:$0xff]  ;;  %v2573_v53 = vld [vmem:[%s3584_s27 + $0x160] sm:$0xff] }
  0xb7   : > { %v2576_v54 = vld [vmem:[%s3584_s27 + $0x178] sm:$0xff]  ;;  %v2575_v55 = vld [vmem:[%s3584_s27 + $0x170] sm:$0xff]  ;;  %v2602_v56 = vld [vmem:[%s3584_s27 + $0x248] sm:$0xff]  ;;  %p2878_p5 = pnand %p2877_p4, %p2871_p1 }
  0xb8   : > { %1384 = vrot.lane.b32.xlu1 %v2558_v36, %s2930_s28  ;;  %1382 = vrot.lane.b32.xlu0 %v2557_v37, %s2930_s28  ;;  %v2601_v57 = vld [vmem:[%s3584_s27 + $0x240] sm:$0xff]  ;;  %v2604_v58 = vld [vmem:[%s3584_s27 + $0x258] sm:$0xff] }
  0xb9   : > { %v2603_v59 = vld [vmem:[%s3584_s27 + $0x250] sm:$0xff]  ;;  %v2606_v60 = vld [vmem:[%s3584_s27 + $0x268] sm:$0xff]  ;;  %v2605_v61 = vld [vmem:[%s3584_s27 + $0x260] sm:$0xff] }
  0xba   : > { %v2608_v62 = vld [vmem:[%s3584_s27 + $0x278] sm:$0xff]  ;;  %v2607_v63 = vld [vmem:[%s3584_s27 + $0x270] sm:$0xff]  ;;  %v2610_v0 = vld [vmem:[%s3584_s27 + $0x288] sm:$0xff] }
  0xbb   : > { %v2609_v1 = vld [vmem:[%s3584_s27 + $0x280] sm:$0xff]  ;;  %v2612_v2 = vld [vmem:[%s3584_s27 + $0x298] sm:$0xff]  ;;  %v2611_v3 = vld [vmem:[%s3584_s27 + $0x290] sm:$0xff] }
  0xbc   : > { %1388 = vrot.lane.b32.xlu1 %v2560_v38, %s2930_s28  ;;  %1386 = vrot.lane.b32.xlu0 %v2559_v39, %s2930_s28  ;;  %v2614_v4 = vld [vmem:[%s3584_s27 + $0x2a8] sm:$0xff]  ;;  %v2613_v5 = vld [vmem:[%s3584_s27 + $0x2a0] sm:$0xff] }
  0xbd   : > { %v2616_v6 = vld [vmem:[%s3584_s27 + $0x2b8] sm:$0xff]  ;;  %v2615_v7 = vld [vmem:[%s3584_s27 + $0x2b0] sm:$0xff]  ;;  %v2618_v8 = vld [vmem:[%s3584_s27 + $0x2c8] sm:$0xff] }
  0xbe   : > { %v2617_v9 = vld [vmem:[%s3584_s27 + $0x2c0] sm:$0xff]  ;;  %v2620_v10 = vld [vmem:[%s3584_s27 + $0x2d8] sm:$0xff]  ;;  %v2619_v11 = vld [vmem:[%s3584_s27 + $0x2d0] sm:$0xff] }
  0xbf   : > { %v2622_v12 = vld [vmem:[%s3584_s27 + $0x2e8] sm:$0xff]  ;;  %v2621_v13 = vld [vmem:[%s3584_s27 + $0x2e0] sm:$0xff]  ;;  %v2624_v14 = vld [vmem:[%s3584_s27 + $0x2f8] sm:$0xff] }
  0xc0   : > { %1392 = vrot.lane.b32.xlu1 %v2562_v40, %s2930_s28  ;;  %1390 = vrot.lane.b32.xlu0 %v2561_v41, %s2930_s28  ;;  %v2623_v15 = vld [vmem:[%s3584_s27 + $0x2f0] sm:$0xff]  ;;  %v2650_v16 = vld [vmem:[%s3584_s27 + $0x3c8] sm:$0xff] }
  0xc1   : > { %v2649_v17 = vld [vmem:[%s3584_s27 + $0x3c0] sm:$0xff]  ;;  %v2652_v18 = vld [vmem:[%s3584_s27 + $0x3d8] sm:$0xff]  ;;  %v2651_v19 = vld [vmem:[%s3584_s27 + $0x3d0] sm:$0xff] }
  0xc2   : > { %v2654_v20 = vld [vmem:[%s3584_s27 + $0x3e8] sm:$0xff]  ;;  %v2653_v21 = vld [vmem:[%s3584_s27 + $0x3e0] sm:$0xff]  ;;  %v2656_v22 = vld [vmem:[%s3584_s27 + $0x3f8] sm:$0xff] }
  0xc3   : > { %v2655_v23 = vld [vmem:[%s3584_s27 + $0x3f0] sm:$0xff]  ;;  %v2658_v24 = vld [vmem:[%s3584_s27 + $0x408] sm:$0xff]  ;;  %v2657_v25 = vld [vmem:[%s3584_s27 + $0x400] sm:$0xff] }
  0xc4   : > { %1396 = vrot.lane.b32.xlu1 %v2564_v42, %s2930_s28  ;;  %1394 = vrot.lane.b32.xlu0 %v2563_v43, %s2930_s28  ;;  %v1303_v26 = vld [vmem:[%s3584_s27 + $0x10] sm:$0xff]  ;;  %v1301_v27 = vld [vmem:[%s3584_s27] sm:$0xff] }
  0xc5   : > { %v2660_v28 = vld [vmem:[%s3584_s27 + $0x418] sm:$0xff]  ;;  %v2659_v29 = vld [vmem:[%s3584_s27 + $0x410] sm:$0xff]  ;;  %v1302_v35 = vld [vmem:[%s3584_s27 + $0x8] sm:$0xff] }
  0xc6   : > { %v1304_v34 = vld [vmem:[%s3584_s27 + $0x18] sm:$0xff]  ;;  %v2662_v36 = vld [vmem:[%s3584_s27 + $0x428] sm:$0xff]  ;;  %v2661_v37 = vld [vmem:[%s3584_s27 + $0x420] sm:$0xff] }
  0xc7   : > { %v1306_v42 = vld [vmem:[%s3584_s27 + $0x28] sm:$0xff]  ;;  %v1305_v43 = vld [vmem:[%s3584_s27 + $0x20] sm:$0xff] }
  0xc8   : > { %1400 = vrot.lane.b32.xlu1 %v2566_v44, %s2930_s28  ;;  %1398 = vrot.lane.b32.xlu0 %v2565_v45, %s2930_s28  ;;  %v2664_v44 = vld [vmem:[%s3584_s27 + $0x438] sm:$0xff]  ;;  %v2663_v45 = vld [vmem:[%s3584_s27 + $0x430] sm:$0xff] }
  0xcc   : > { %1404 = vrot.lane.b32.xlu1 %v2568_v46, %s2930_s28  ;;  %1402 = vrot.lane.b32.xlu0 %v2567_v47, %s2930_s28 }
  0xd0   : > { %1408 = vrot.lane.b32.xlu1 %v2570_v48, %s2930_s28  ;;  %1406 = vrot.lane.b32.xlu0 %v2569_v49, %s2930_s28 }
  0xd4   : > { %1412 = vrot.lane.b32.xlu1 %v2572_v50, %s2930_s28  ;;  %1410 = vrot.lane.b32.xlu0 %v2571_v51, %s2930_s28  ;;  %v1308_v50 = vld [vmem:[%s3584_s27 + $0x38] sm:$0xff]  ;;  %v1307_v51 = vld [vmem:[%s3584_s27 + $0x30] sm:$0xff] }
  0xd8   : > { %1416 = vrot.lane.b32.xlu1 %v2574_v52, %s2930_s28  ;;  %1414 = vrot.lane.b32.xlu0 %v2573_v53, %s2930_s28  ;;  %v2666_v52 = vld [vmem:[%s3584_s27 + $0x448] sm:$0xff]  ;;  %v2665_v53 = vld [vmem:[%s3584_s27 + $0x440] sm:$0xff] }
  0xdc   : > { %1420 = vrot.lane.b32.xlu1 %v2576_v54, %s2930_s28  ;;  %1418 = vrot.lane.b32.xlu0 %v2575_v55, %s2930_s28 }
  0xe0   : > { %1571 = vrot.lane.b32.xlu1 %v2602_v56, %s2930_s28  ;;  %1569 = vrot.lane.b32.xlu0 %v2601_v57, %s2930_s28 }
  0xe4   : > { %1575 = vrot.lane.b32.xlu1 %v2604_v58, %s2930_s28  ;;  %1573 = vrot.lane.b32.xlu0 %v2603_v59, %s2930_s28  ;;  %v1310_v58 = vld [vmem:[%s3584_s27 + $0x48] sm:$0xff]  ;;  %v1309_v59 = vld [vmem:[%s3584_s27 + $0x40] sm:$0xff] }
  0xe8   : > { %1579 = vrot.lane.b32.xlu1 %v2606_v60, %s2930_s28  ;;  %1577 = vrot.lane.b32.xlu0 %v2605_v61, %s2930_s28  ;;  %v2668_v60 = vld [vmem:[%s3584_s27 + $0x458] sm:$0xff]  ;;  %v2667_v61 = vld [vmem:[%s3584_s27 + $0x450] sm:$0xff] }
  0xec   : > { %1583 = vrot.lane.b32.xlu1 %v2608_v62, %s2930_s28  ;;  %1581 = vrot.lane.b32.xlu0 %v2607_v63, %s2930_s28 }
  0xf0   : > { %1587 = vrot.lane.b32.xlu1 %v2610_v0, %s2930_s28  ;;  %1585 = vrot.lane.b32.xlu0 %v2609_v1, %s2930_s28 }
  0xf4   : > { %1591 = vrot.lane.b32.xlu1 %v2612_v2, %s2930_s28  ;;  %1589 = vrot.lane.b32.xlu0 %v2611_v3, %s2930_s28  ;;  %v1312_v2 = vld [vmem:[%s3584_s27 + $0x58] sm:$0xff]  ;;  %v1311_v3 = vld [vmem:[%s3584_s27 + $0x50] sm:$0xff] }
  0xf8   : > { %1595 = vrot.lane.b32.xlu1 %v2614_v4, %s2930_s28  ;;  %1593 = vrot.lane.b32.xlu0 %v2613_v5, %s2930_s28  ;;  %v2670_v4 = vld [vmem:[%s3584_s27 + $0x468] sm:$0xff]  ;;  %v2669_v5 = vld [vmem:[%s3584_s27 + $0x460] sm:$0xff] }
  0xfc   : > { %1599 = vrot.lane.b32.xlu1 %v2616_v6, %s2930_s28  ;;  %1597 = vrot.lane.b32.xlu0 %v2615_v7, %s2930_s28 }
 0x100   : > { %1603 = vrot.lane.b32.xlu1 %v2618_v8, %s2930_s28  ;;  %1601 = vrot.lane.b32.xlu0 %v2617_v9, %s2930_s28 }
 0x104   : > { %1607 = vrot.lane.b32.xlu1 %v2620_v10, %s2930_s28  ;;  %1605 = vrot.lane.b32.xlu0 %v2619_v11, %s2930_s28  ;;  %v1314_v10 = vld [vmem:[%s3584_s27 + $0x68] sm:$0xff]  ;;  %v1313_v11 = vld [vmem:[%s3584_s27 + $0x60] sm:$0xff] }
 0x108   : > { %1611 = vrot.lane.b32.xlu1 %v2622_v12, %s2930_s28  ;;  %1609 = vrot.lane.b32.xlu0 %v2621_v13, %s2930_s28  ;;  %v2672_v12 = vld [vmem:[%s3584_s27 + $0x478] sm:$0xff]  ;;  %v2671_v13 = vld [vmem:[%s3584_s27 + $0x470] sm:$0xff] }
 0x10c   : > { %1615 = vrot.lane.b32.xlu1 %v2624_v14, %s2930_s28  ;;  %1613 = vrot.lane.b32.xlu0 %v2623_v15, %s2930_s28 }
 0x110   : > { %1765 = vrot.lane.b32.xlu1 %v2650_v16, %s2930_s28  ;;  %1763 = vrot.lane.b32.xlu0 %v2649_v17, %s2930_s28 }
 0x114   : > { %1769 = vrot.lane.b32.xlu1 %v2652_v18, %s2930_s28  ;;  %1767 = vrot.lane.b32.xlu0 %v2651_v19, %s2930_s28  ;;  %v1316_v18 = vld [vmem:[%s3584_s27 + $0x78] sm:$0xff]  ;;  %v1315_v19 = vld [vmem:[%s3584_s27 + $0x70] sm:$0xff] }
 0x118   : > { %1773 = vrot.lane.b32.xlu1 %v2654_v20, %s2930_s28  ;;  %1771 = vrot.lane.b32.xlu0 %v2653_v21, %s2930_s28  ;;  %v2698_v20 = vld [vmem:[%s3584_s27 + $0x548] sm:$0xff]  ;;  %v2697_v21 = vld [vmem:[%s3584_s27 + $0x540] sm:$0xff] }
 0x11c   : > { %1777 = vrot.lane.b32.xlu1 %v2656_v22, %s2930_s28  ;;  %1775 = vrot.lane.b32.xlu0 %v2655_v23, %s2930_s28 }
 0x120   : > { %1781 = vrot.lane.b32.xlu1 %v2658_v24, %s2930_s28  ;;  %1779 = vrot.lane.b32.xlu0 %v2657_v25, %s2930_s28 }
 0x122   : > { %v1379_v30 = vpop.permute.xlu1 %1378  ;;  %v1375_v31 = vpop.permute.xlu0 %1374 }
 0x123   : > { %v1449_v32 = vsel %vm1446_vm0, %v1303_v26, %v1379_v30  ;;  %v1447_v33 = vsel %vm1446_vm0, %v1301_v27, %v1375_v31  ;;  %v1318_v26 = vld [vmem:[%s3584_s27 + $0x88] sm:$0xff]  ;;  %v1317_v27 = vld [vmem:[%s3584_s27 + $0x80] sm:$0xff] }
 0x124   : > { %1473 = vst [vmem:[%s3709_s30 + $0x60] sm:$0xff] %v1449_v32  ;;  %1471 = vst [vmem:[%s3709_s30] sm:$0xff] %v1447_v33  ;;  %1785 = vrot.lane.b32.xlu1 %v2660_v28, %s2930_s28  ;;  %1783 = vrot.lane.b32.xlu0 %v2659_v29, %s2930_s28 }
 0x125   : > { %v2700_v28 = vld [vmem:[%s3584_s27 + $0x558] sm:$0xff]  ;;  %v2699_v29 = vld [vmem:[%s3584_s27 + $0x550] sm:$0xff] }
 0x126   : > { %v1381_v38 = vpop.permute.xlu1 %1380  ;;  %v1377_v39 = vpop.permute.xlu0 %1376 }
 0x127   : > { %v1450_v40 = vsel %vm1446_vm0, %v1304_v34, %v1381_v38  ;;  %v1448_v41 = vsel %vm1446_vm0, %v1302_v35, %v1377_v39  ;;  %v1320_v34 = vld [vmem:[%s3584_s27 + $0x98] sm:$0xff]  ;;  %v1319_v35 = vld [vmem:[%s3584_s27 + $0x90] sm:$0xff] }
 0x128   : > { %1474 = vst [vmem:[%s3709_s30 + $0x90] sm:$0xff] %v1450_v40  ;;  %1472 = vst [vmem:[%s3709_s30 + $0x30] sm:$0xff] %v1448_v41  ;;  %1789 = vrot.lane.b32.xlu1 %v2662_v36, %s2930_s28  ;;  %1787 = vrot.lane.b32.xlu0 %v2661_v37, %s2930_s28 }
 0x129   : > { %v2702_v36 = vld [vmem:[%s3584_s27 + $0x568] sm:$0xff]  ;;  %v2701_v37 = vld [vmem:[%s3584_s27 + $0x560] sm:$0xff] }
 0x12a   : > { %v1385_v46 = vpop.permute.xlu1 %1384  ;;  %v1383_v47 = vpop.permute.xlu0 %1382 }
 0x12b   : > { %v1452_v48 = vsel %vm1446_vm0, %v1306_v42, %v1385_v46  ;;  %v1451_v49 = vsel %vm1446_vm0, %v1305_v43, %v1383_v47  ;;  %v1322_v42 = vld [vmem:[%s3584_s27 + $0xa8] sm:$0xff]  ;;  %v1321_v43 = vld [vmem:[%s3584_s27 + $0xa0] sm:$0xff] }
 0x12c   : > { %1476 = vst [vmem:[%s3709_s30 + $0xf0] sm:$0xff] %v1452_v48  ;;  %1475 = vst [vmem:[%s3709_s30 + $0xc0] sm:$0xff] %v1451_v49  ;;  %1793 = vrot.lane.b32.xlu1 %v2664_v44, %s2930_s28  ;;  %1791 = vrot.lane.b32.xlu0 %v2663_v45, %s2930_s28 }
 0x12d   : > { %v2704_v44 = vld [vmem:[%s3584_s27 + $0x578] sm:$0xff]  ;;  %v2703_v45 = vld [vmem:[%s3584_s27 + $0x570] sm:$0xff] }
 0x12e   : > { %v1389_v54 = vpop.permute.xlu1 %1388  ;;  %v1387_v55 = vpop.permute.xlu0 %1386 }
 0x12f   : > { %v1454_v56 = vsel %vm1446_vm0, %v1308_v50, %v1389_v54  ;;  %v1453_v57 = vsel %vm1446_vm0, %v1307_v51, %v1387_v55  ;;  %v1324_v50 = vld [vmem:[%s3584_s27 + $0xb8] sm:$0xff]  ;;  %v1323_v51 = vld [vmem:[%s3584_s27 + $0xb0] sm:$0xff] }
 0x130   : > { %1478 = vst [vmem:[%s3709_s30 + $0x150] sm:$0xff] %v1454_v56  ;;  %1477 = vst [vmem:[%s3709_s30 + $0x120] sm:$0xff] %v1453_v57  ;;  %1797 = vrot.lane.b32.xlu1 %v2666_v52, %s2930_s28  ;;  %1795 = vrot.lane.b32.xlu0 %v2665_v53, %s2930_s28 }
 0x131   : > { %v2706_v52 = vld [vmem:[%s3584_s27 + $0x588] sm:$0xff]  ;;  %v2705_v53 = vld [vmem:[%s3584_s27 + $0x580] sm:$0xff] }
 0x132   : > { %v1393_v62 = vpop.permute.xlu1 %1392  ;;  %v1391_v63 = vpop.permute.xlu0 %1390 }
 0x133   : > { %v1456_v0 = vsel %vm1446_vm0, %v1310_v58, %v1393_v62  ;;  %v1455_v1 = vsel %vm1446_vm0, %v1309_v59, %v1391_v63  ;;  %v2578_v58 = vld [vmem:[%s3584_s27 + $0x188] sm:$0xff]  ;;  %v2577_v59 = vld [vmem:[%s3584_s27 + $0x180] sm:$0xff] }
 0x134   : > { %1480 = vst [vmem:[%s3709_s30 + $0x1b0] sm:$0xff] %v1456_v0  ;;  %1479 = vst [vmem:[%s3709_s30 + $0x180] sm:$0xff] %v1455_v1  ;;  %1801 = vrot.lane.b32.xlu1 %v2668_v60, %s2930_s28  ;;  %1799 = vrot.lane.b32.xlu0 %v2667_v61, %s2930_s28 }
 0x135   : > { %v2708_v60 = vld [vmem:[%s3584_s27 + $0x598] sm:$0xff]  ;;  %v2707_v61 = vld [vmem:[%s3584_s27 + $0x590] sm:$0xff] }
 0x136   : > { %v1397_v6 = vpop.permute.xlu1 %1396  ;;  %v1395_v7 = vpop.permute.xlu0 %1394 }
 0x137   : > { %v1458_v8 = vsel %vm1446_vm0, %v1312_v2, %v1397_v6  ;;  %v1457_v9 = vsel %vm1446_vm0, %v1311_v3, %v1395_v7  ;;  %v2580_v2 = vld [vmem:[%s3584_s27 + $0x198] sm:$0xff]  ;;  %v2579_v3 = vld [vmem:[%s3584_s27 + $0x190] sm:$0xff] }
 0x138   : > { %1482 = vst [vmem:[%s3709_s30 + $0x210] sm:$0xff] %v1458_v8  ;;  %1481 = vst [vmem:[%s3709_s30 + $0x1e0] sm:$0xff] %v1457_v9  ;;  %1805 = vrot.lane.b32.xlu1 %v2670_v4, %s2930_s28  ;;  %1803 = vrot.lane.b32.xlu0 %v2669_v5, %s2930_s28 }
 0x139   : > { %v2710_v4 = vld [vmem:[%s3584_s27 + $0x5a8] sm:$0xff]  ;;  %v2709_v5 = vld [vmem:[%s3584_s27 + $0x5a0] sm:$0xff] }
 0x13a   : > { %v1401_v14 = vpop.permute.xlu1 %1400  ;;  %v1399_v15 = vpop.permute.xlu0 %1398 }
 0x13b   : > { %v1460_v16 = vsel %vm1446_vm0, %v1314_v10, %v1401_v14  ;;  %v1459_v17 = vsel %vm1446_vm0, %v1313_v11, %v1399_v15  ;;  %v2582_v10 = vld [vmem:[%s3584_s27 + $0x1a8] sm:$0xff]  ;;  %v2581_v11 = vld [vmem:[%s3584_s27 + $0x1a0] sm:$0xff] }
 0x13c   : > { %1484 = vst [vmem:[%s3709_s30 + $0x270] sm:$0xff] %v1460_v16  ;;  %1483 = vst [vmem:[%s3709_s30 + $0x240] sm:$0xff] %v1459_v17  ;;  %1809 = vrot.lane.b32.xlu1 %v2672_v12, %s2930_s28  ;;  %1807 = vrot.lane.b32.xlu0 %v2671_v13, %s2930_s28 }
 0x13d   : > { %v2712_v12 = vld [vmem:[%s3584_s27 + $0x5b8] sm:$0xff]  ;;  %v2711_v13 = vld [vmem:[%s3584_s27 + $0x5b0] sm:$0xff] }
 0x13e   : > { %v1405_v22 = vpop.permute.xlu1 %1404  ;;  %v1403_v23 = vpop.permute.xlu0 %1402 }
 0x13f   : > { %v1462_v24 = vsel %vm1446_vm0, %v1316_v18, %v1405_v22  ;;  %v1461_v25 = vsel %vm1446_vm0, %v1315_v19, %v1403_v23  ;;  %v2584_v18 = vld [vmem:[%s3584_s27 + $0x1b8] sm:$0xff]  ;;  %v2583_v19 = vld [vmem:[%s3584_s27 + $0x1b0] sm:$0xff] }
 0x140   : > { %1486 = vst [vmem:[%s3709_s30 + $0x2d0] sm:$0xff] %v1462_v24  ;;  %1485 = vst [vmem:[%s3709_s30 + $0x2a0] sm:$0xff] %v1461_v25  ;;  %1959 = vrot.lane.b32.xlu1 %v2698_v20, %s2930_s28  ;;  %1957 = vrot.lane.b32.xlu0 %v2697_v21, %s2930_s28 }
 0x141   : > { %v2714_v20 = vld [vmem:[%s3584_s27 + $0x5c8] sm:$0xff]  ;;  %v2713_v21 = vld [vmem:[%s3584_s27 + $0x5c0] sm:$0xff] }
 0x142   : > { %v1409_v30 = vpop.permute.xlu1 %1408  ;;  %v1407_v31 = vpop.permute.xlu0 %1406 }
 0x143   : > { %v1464_v32 = vsel %vm1446_vm0, %v1318_v26, %v1409_v30  ;;  %v1463_v33 = vsel %vm1446_vm0, %v1317_v27, %v1407_v31  ;;  %v2586_v26 = vld [vmem:[%s3584_s27 + $0x1c8] sm:$0xff]  ;;  %v2585_v27 = vld [vmem:[%s3584_s27 + $0x1c0] sm:$0xff] }
 0x144   : > { %1488 = vst [vmem:[%s3709_s30 + $0x330] sm:$0xff] %v1464_v32  ;;  %1487 = vst [vmem:[%s3709_s30 + $0x300] sm:$0xff] %v1463_v33  ;;  %1963 = vrot.lane.b32.xlu1 %v2700_v28, %s2930_s28  ;;  %1961 = vrot.lane.b32.xlu0 %v2699_v29, %s2930_s28 }
 0x145   : > { %v2716_v28 = vld [vmem:[%s3584_s27 + $0x5d8] sm:$0xff]  ;;  %v2715_v29 = vld [vmem:[%s3584_s27 + $0x5d0] sm:$0xff] }
 0x146   : > { %v1413_v38 = vpop.permute.xlu1 %1412  ;;  %v1411_v39 = vpop.permute.xlu0 %1410 }
 0x147   : > { %v1466_v40 = vsel %vm1446_vm0, %v1320_v34, %v1413_v38  ;;  %v1465_v41 = vsel %vm1446_vm0, %v1319_v35, %v1411_v39  ;;  %v2588_v34 = vld [vmem:[%s3584_s27 + $0x1d8] sm:$0xff]  ;;  %v2587_v35 = vld [vmem:[%s3584_s27 + $0x1d0] sm:$0xff] }
 0x148   : > { %1490 = vst [vmem:[%s3709_s30 + $0x390] sm:$0xff] %v1466_v40  ;;  %1489 = vst [vmem:[%s3709_s30 + $0x360] sm:$0xff] %v1465_v41  ;;  %1967 = vrot.lane.b32.xlu1 %v2702_v36, %s2930_s28  ;;  %1965 = vrot.lane.b32.xlu0 %v2701_v37, %s2930_s28 }
 0x149   : > { %v2718_v36 = vld [vmem:[%s3584_s27 + $0x5e8] sm:$0xff]  ;;  %v2717_v37 = vld [vmem:[%s3584_s27 + $0x5e0] sm:$0xff] }
 0x14a   : > { %v1417_v46 = vpop.permute.xlu1 %1416  ;;  %v1415_v47 = vpop.permute.xlu0 %1414 }
 0x14b   : > { %v1468_v48 = vsel %vm1446_vm0, %v1322_v42, %v1417_v46  ;;  %v1467_v49 = vsel %vm1446_vm0, %v1321_v43, %v1415_v47  ;;  %v2590_v42 = vld [vmem:[%s3584_s27 + $0x1e8] sm:$0xff]  ;;  %v2589_v43 = vld [vmem:[%s3584_s27 + $0x1e0] sm:$0xff] }
 0x14c   : > { %1492 = vst [vmem:[%s3709_s30 + $0x3f0] sm:$0xff] %v1468_v48  ;;  %1491 = vst [vmem:[%s3709_s30 + $0x3c0] sm:$0xff] %v1467_v49  ;;  %1971 = vrot.lane.b32.xlu1 %v2704_v44, %s2930_s28  ;;  %1969 = vrot.lane.b32.xlu0 %v2703_v45, %s2930_s28 }
 0x14d   : > { %v2720_v44 = vld [vmem:[%s3584_s27 + $0x5f8] sm:$0xff]  ;;  %v2719_v45 = vld [vmem:[%s3584_s27 + $0x5f0] sm:$0xff] }
 0x14e   : > { %v1421_v54 = vpop.permute.xlu1 %1420  ;;  %v1419_v55 = vpop.permute.xlu0 %1418 }
 0x14f   : > { %v1470_v56 = vsel %vm1446_vm0, %v1324_v50, %v1421_v54  ;;  %v1469_v57 = vsel %vm1446_vm0, %v1323_v51, %v1419_v55  ;;  %v2592_v50 = vld [vmem:[%s3584_s27 + $0x1f8] sm:$0xff]  ;;  %v2591_v51 = vld [vmem:[%s3584_s27 + $0x1f0] sm:$0xff] }
 0x150   : > { %1494 = vst [vmem:[%s3709_s30 + $0x450] sm:$0xff] %v1470_v56  ;;  %1493 = vst [vmem:[%s3709_s30 + $0x420] sm:$0xff] %v1469_v57  ;;  %1975 = vrot.lane.b32.xlu1 %v2706_v52, %s2930_s28  ;;  %1973 = vrot.lane.b32.xlu0 %v2705_v53, %s2930_s28 }
 0x151   : > { %v2746_v52 = vld [vmem:[%s3584_s27 + $0x6c8] sm:$0xff]  ;;  %v2745_v53 = vld [vmem:[%s3584_s27 + $0x6c0] sm:$0xff] }
 0x152   : > { %v1572_v62 = vpop.permute.xlu1 %1571  ;;  %v1570_v63 = vpop.permute.xlu0 %1569 }
 0x153   : > { %v1642_v0 = vsel %vm1446_vm0, %v2578_v58, %v1572_v62  ;;  %v1641_v1 = vsel %vm1446_vm0, %v2577_v59, %v1570_v63  ;;  %v2594_v58 = vld [vmem:[%s3584_s27 + $0x208] sm:$0xff]  ;;  %v2593_v59 = vld [vmem:[%s3584_s27 + $0x200] sm:$0xff] }
 0x154   : > { %1666 = vst [vmem:[%s3709_s30 + $0x38] sm:$0xff] %v1642_v0  ;;  %1665 = vst [vmem:[%s3709_s30 + $0x8] sm:$0xff] %v1641_v1  ;;  %1979 = vrot.lane.b32.xlu1 %v2708_v60, %s2930_s28  ;;  %1977 = vrot.lane.b32.xlu0 %v2707_v61, %s2930_s28 }
 0x155   : > { %v2748_v60 = vld [vmem:[%s3584_s27 + $0x6d8] sm:$0xff]  ;;  %v2747_v61 = vld [vmem:[%s3584_s27 + $0x6d0] sm:$0xff] }
 0x156   : > { %v1576_v6 = vpop.permute.xlu1 %1575  ;;  %v1574_v7 = vpop.permute.xlu0 %1573 }
 0x157   : > { %v1644_v8 = vsel %vm1446_vm0, %v2580_v2, %v1576_v6  ;;  %v1643_v9 = vsel %vm1446_vm0, %v2579_v3, %v1574_v7  ;;  %v2596_v2 = vld [vmem:[%s3584_s27 + $0x218] sm:$0xff]  ;;  %v2595_v3 = vld [vmem:[%s3584_s27 + $0x210] sm:$0xff] }
 0x158   : > { %1668 = vst [vmem:[%s3709_s30 + $0x98] sm:$0xff] %v1644_v8  ;;  %1667 = vst [vmem:[%s3709_s30 + $0x68] sm:$0xff] %v1643_v9  ;;  %1983 = vrot.lane.b32.xlu1 %v2710_v4, %s2930_s28  ;;  %1981 = vrot.lane.b32.xlu0 %v2709_v5, %s2930_s28 }
 0x159   : > { %v2750_v4 = vld [vmem:[%s3584_s27 + $0x6e8] sm:$0xff]  ;;  %v2749_v5 = vld [vmem:[%s3584_s27 + $0x6e0] sm:$0xff] }
 0x15a   : > { %v1580_v14 = vpop.permute.xlu1 %1579  ;;  %v1578_v15 = vpop.permute.xlu0 %1577 }
 0x15b   : > { %v1646_v16 = vsel %vm1446_vm0, %v2582_v10, %v1580_v14  ;;  %v1645_v17 = vsel %vm1446_vm0, %v2581_v11, %v1578_v15  ;;  %v2598_v10 = vld [vmem:[%s3584_s27 + $0x228] sm:$0xff]  ;;  %v2597_v11 = vld [vmem:[%s3584_s27 + $0x220] sm:$0xff] }
 0x15c   : > { %1670 = vst [vmem:[%s3709_s30 + $0xf8] sm:$0xff] %v1646_v16  ;;  %1669 = vst [vmem:[%s3709_s30 + $0xc8] sm:$0xff] %v1645_v17  ;;  %1987 = vrot.lane.b32.xlu1 %v2712_v12, %s2930_s28  ;;  %1985 = vrot.lane.b32.xlu0 %v2711_v13, %s2930_s28 }
 0x15d   : > { %v2752_v12 = vld [vmem:[%s3584_s27 + $0x6f8] sm:$0xff]  ;;  %v2751_v13 = vld [vmem:[%s3584_s27 + $0x6f0] sm:$0xff] }
 0x15e   : > { %v1584_v22 = vpop.permute.xlu1 %1583  ;;  %v1582_v23 = vpop.permute.xlu0 %1581 }
 0x15f   : > { %v1648_v24 = vsel %vm1446_vm0, %v2584_v18, %v1584_v22  ;;  %v1647_v25 = vsel %vm1446_vm0, %v2583_v19, %v1582_v23  ;;  %v2600_v18 = vld [vmem:[%s3584_s27 + $0x238] sm:$0xff]  ;;  %v2599_v19 = vld [vmem:[%s3584_s27 + $0x230] sm:$0xff] }
 0x160   : > { %1672 = vst [vmem:[%s3709_s30 + $0x158] sm:$0xff] %v1648_v24  ;;  %1671 = vst [vmem:[%s3709_s30 + $0x128] sm:$0xff] %v1647_v25  ;;  %1991 = vrot.lane.b32.xlu1 %v2714_v20, %s2930_s28  ;;  %1989 = vrot.lane.b32.xlu0 %v2713_v21, %s2930_s28 }
 0x161   : > { %v2754_v20 = vld [vmem:[%s3584_s27 + $0x708] sm:$0xff]  ;;  %v2753_v21 = vld [vmem:[%s3584_s27 + $0x700] sm:$0xff] }
 0x162   : > { %v1588_v30 = vpop.permute.xlu1 %1587  ;;  %v1586_v31 = vpop.permute.xlu0 %1585 }
 0x163   : > { %v1650_v32 = vsel %vm1446_vm0, %v2586_v26, %v1588_v30  ;;  %v1649_v33 = vsel %vm1446_vm0, %v2585_v27, %v1586_v31  ;;  %v2626_v26 = vld [vmem:[%s3584_s27 + $0x308] sm:$0xff]  ;;  %v2625_v27 = vld [vmem:[%s3584_s27 + $0x300] sm:$0xff] }
 0x164   : > { %1674 = vst [vmem:[%s3709_s30 + $0x1b8] sm:$0xff] %v1650_v32  ;;  %1673 = vst [vmem:[%s3709_s30 + $0x188] sm:$0xff] %v1649_v33  ;;  %1995 = vrot.lane.b32.xlu1 %v2716_v28, %s2930_s28  ;;  %1993 = vrot.lane.b32.xlu0 %v2715_v29, %s2930_s28 }
 0x165   : > { %v2756_v28 = vld [vmem:[%s3584_s27 + $0x718] sm:$0xff]  ;;  %v2755_v29 = vld [vmem:[%s3584_s27 + $0x710] sm:$0xff] }
 0x166   : > { %v1592_v38 = vpop.permute.xlu1 %1591  ;;  %v1590_v39 = vpop.permute.xlu0 %1589 }
 0x167   : > { %v1652_v40 = vsel %vm1446_vm0, %v2588_v34, %v1592_v38  ;;  %v1651_v41 = vsel %vm1446_vm0, %v2587_v35, %v1590_v39  ;;  %v2628_v34 = vld [vmem:[%s3584_s27 + $0x318] sm:$0xff]  ;;  %v2627_v35 = vld [vmem:[%s3584_s27 + $0x310] sm:$0xff] }
 0x168   : > { %1676 = vst [vmem:[%s3709_s30 + $0x218] sm:$0xff] %v1652_v40  ;;  %1675 = vst [vmem:[%s3709_s30 + $0x1e8] sm:$0xff] %v1651_v41  ;;  %1999 = vrot.lane.b32.xlu1 %v2718_v36, %s2930_s28  ;;  %1997 = vrot.lane.b32.xlu0 %v2717_v37, %s2930_s28 }
 0x169   : > { %v2758_v36 = vld [vmem:[%s3584_s27 + $0x728] sm:$0xff]  ;;  %v2757_v37 = vld [vmem:[%s3584_s27 + $0x720] sm:$0xff] }
 0x16a   : > { %v1596_v46 = vpop.permute.xlu1 %1595  ;;  %v1594_v47 = vpop.permute.xlu0 %1593 }
 0x16b   : > { %v1654_v48 = vsel %vm1446_vm0, %v2590_v42, %v1596_v46  ;;  %v1653_v49 = vsel %vm1446_vm0, %v2589_v43, %v1594_v47  ;;  %v2630_v42 = vld [vmem:[%s3584_s27 + $0x328] sm:$0xff]  ;;  %v2629_v43 = vld [vmem:[%s3584_s27 + $0x320] sm:$0xff] }
 0x16c   : > { %1678 = vst [vmem:[%s3709_s30 + $0x278] sm:$0xff] %v1654_v48  ;;  %1677 = vst [vmem:[%s3709_s30 + $0x248] sm:$0xff] %v1653_v49  ;;  %2003 = vrot.lane.b32.xlu1 %v2720_v44, %s2930_s28  ;;  %2001 = vrot.lane.b32.xlu0 %v2719_v45, %s2930_s28 }
 0x16d   : > { %v2760_v44 = vld [vmem:[%s3584_s27 + $0x738] sm:$0xff]  ;;  %v2759_v45 = vld [vmem:[%s3584_s27 + $0x730] sm:$0xff] }
 0x16e   : > { %v1600_v54 = vpop.permute.xlu1 %1599  ;;  %v1598_v55 = vpop.permute.xlu0 %1597 }
 0x16f   : > { %v1656_v56 = vsel %vm1446_vm0, %v2592_v50, %v1600_v54  ;;  %v1655_v57 = vsel %vm1446_vm0, %v2591_v51, %v1598_v55  ;;  %v2632_v50 = vld [vmem:[%s3584_s27 + $0x338] sm:$0xff]  ;;  %v2631_v51 = vld [vmem:[%s3584_s27 + $0x330] sm:$0xff] }
 0x170   : > { %1680 = vst [vmem:[%s3709_s30 + $0x2d8] sm:$0xff] %v1656_v56  ;;  %1679 = vst [vmem:[%s3709_s30 + $0x2a8] sm:$0xff] %v1655_v57  ;;  %2153 = vrot.lane.b32.xlu1 %v2746_v52, %s2930_s28  ;;  %2151 = vrot.lane.b32.xlu0 %v2745_v53, %s2930_s28 }
 0x171   : > { %v2762_v52 = vld [vmem:[%s3584_s27 + $0x748] sm:$0xff]  ;;  %v2761_v53 = vld [vmem:[%s3584_s27 + $0x740] sm:$0xff] }
 0x172   : > { %v1604_v62 = vpop.permute.xlu1 %1603  ;;  %v1602_v63 = vpop.permute.xlu0 %1601 }
 0x173   : > { %v1658_v0 = vsel %vm1446_vm0, %v2594_v58, %v1604_v62  ;;  %v1657_v1 = vsel %vm1446_vm0, %v2593_v59, %v1602_v63  ;;  %v2634_v58 = vld [vmem:[%s3584_s27 + $0x348] sm:$0xff]  ;;  %v2633_v59 = vld [vmem:[%s3584_s27 + $0x340] sm:$0xff] }
 0x174   : > { %1682 = vst [vmem:[%s3709_s30 + $0x338] sm:$0xff] %v1658_v0  ;;  %1681 = vst [vmem:[%s3709_s30 + $0x308] sm:$0xff] %v1657_v1  ;;  %2157 = vrot.lane.b32.xlu1 %v2748_v60, %s2930_s28  ;;  %2155 = vrot.lane.b32.xlu0 %v2747_v61, %s2930_s28 }
 0x175   : > { %v2764_v60 = vld [vmem:[%s3584_s27 + $0x758] sm:$0xff]  ;;  %v2763_v61 = vld [vmem:[%s3584_s27 + $0x750] sm:$0xff] }
 0x176   : > { %v1608_v6 = vpop.permute.xlu1 %1607  ;;  %v1606_v7 = vpop.permute.xlu0 %1605 }
 0x177   : > { %v1660_v8 = vsel %vm1446_vm0, %v2596_v2, %v1608_v6  ;;  %v1659_v9 = vsel %vm1446_vm0, %v2595_v3, %v1606_v7  ;;  %v2636_v2 = vld [vmem:[%s3584_s27 + $0x358] sm:$0xff]  ;;  %v2635_v3 = vld [vmem:[%s3584_s27 + $0x350] sm:$0xff] }
 0x178   : > { %1684 = vst [vmem:[%s3709_s30 + $0x398] sm:$0xff] %v1660_v8  ;;  %1683 = vst [vmem:[%s3709_s30 + $0x368] sm:$0xff] %v1659_v9  ;;  %2161 = vrot.lane.b32.xlu1 %v2750_v4, %s2930_s28  ;;  %2159 = vrot.lane.b32.xlu0 %v2749_v5, %s2930_s28 }
 0x179   : > { %v2766_v4 = vld [vmem:[%s3584_s27 + $0x768] sm:$0xff]  ;;  %v2765_v5 = vld [vmem:[%s3584_s27 + $0x760] sm:$0xff] }
 0x17a   : > { %v1612_v14 = vpop.permute.xlu1 %1611  ;;  %v1610_v15 = vpop.permute.xlu0 %1609 }
 0x17b   : > { %v1662_v16 = vsel %vm1446_vm0, %v2598_v10, %v1612_v14  ;;  %v1661_v17 = vsel %vm1446_vm0, %v2597_v11, %v1610_v15  ;;  %v2638_v10 = vld [vmem:[%s3584_s27 + $0x368] sm:$0xff]  ;;  %v2637_v11 = vld [vmem:[%s3584_s27 + $0x360] sm:$0xff] }
 0x17c   : > { %1686 = vst [vmem:[%s3709_s30 + $0x3f8] sm:$0xff] %v1662_v16  ;;  %1685 = vst [vmem:[%s3709_s30 + $0x3c8] sm:$0xff] %v1661_v17  ;;  %2165 = vrot.lane.b32.xlu1 %v2752_v12, %s2930_s28  ;;  %2163 = vrot.lane.b32.xlu0 %v2751_v13, %s2930_s28 }
 0x17d   : > { %v2768_v12 = vld [vmem:[%s3584_s27 + $0x778] sm:$0xff]  ;;  %v2767_v13 = vld [vmem:[%s3584_s27 + $0x770] sm:$0xff] }
 0x17e   : > { %v1616_v22 = vpop.permute.xlu1 %1615  ;;  %v1614_v23 = vpop.permute.xlu0 %1613 }
 0x17f   : > { %v1664_v24 = vsel %vm1446_vm0, %v2600_v18, %v1616_v22  ;;  %v1663_v25 = vsel %vm1446_vm0, %v2599_v19, %v1614_v23  ;;  %v2640_v18 = vld [vmem:[%s3584_s27 + $0x378] sm:$0xff]  ;;  %v2639_v19 = vld [vmem:[%s3584_s27 + $0x370] sm:$0xff] }
 0x180   : > { %1688 = vst [vmem:[%s3709_s30 + $0x458] sm:$0xff] %v1664_v24  ;;  %1687 = vst [vmem:[%s3709_s30 + $0x428] sm:$0xff] %v1663_v25  ;;  %2169 = vrot.lane.b32.xlu1 %v2754_v20, %s2930_s28  ;;  %2167 = vrot.lane.b32.xlu0 %v2753_v21, %s2930_s28 }
 0x181   : > { %v2794_v20 = vld [vmem:[%s3584_s27 + $0x848] sm:$0xff]  ;;  %v2793_v21 = vld [vmem:[%s3584_s27 + $0x840] sm:$0xff] }
 0x182   : > { %v1766_v30 = vpop.permute.xlu1 %1765  ;;  %v1764_v31 = vpop.permute.xlu0 %1763 }
 0x183   : > { %v1836_v32 = vsel %vm1446_vm0, %v2626_v26, %v1766_v30  ;;  %v1835_v33 = vsel %vm1446_vm0, %v2625_v27, %v1764_v31  ;;  %v2642_v26 = vld [vmem:[%s3584_s27 + $0x388] sm:$0xff]  ;;  %v2641_v27 = vld [vmem:[%s3584_s27 + $0x380] sm:$0xff] }
 0x184   : > { %1860 = vst [vmem:[%s3709_s30 + $0x40] sm:$0xff] %v1836_v32  ;;  %1859 = vst [vmem:[%s3709_s30 + $0x10] sm:$0xff] %v1835_v33  ;;  %2173 = vrot.lane.b32.xlu1 %v2756_v28, %s2930_s28  ;;  %2171 = vrot.lane.b32.xlu0 %v2755_v29, %s2930_s28 }
 0x185   : > { %v2796_v28 = vld [vmem:[%s3584_s27 + $0x858] sm:$0xff]  ;;  %v2795_v29 = vld [vmem:[%s3584_s27 + $0x850] sm:$0xff] }
 0x186   : > { %v1770_v38 = vpop.permute.xlu1 %1769  ;;  %v1768_v39 = vpop.permute.xlu0 %1767 }
 0x187   : > { %v1838_v40 = vsel %vm1446_vm0, %v2628_v34, %v1770_v38  ;;  %v1837_v41 = vsel %vm1446_vm0, %v2627_v35, %v1768_v39  ;;  %v2644_v34 = vld [vmem:[%s3584_s27 + $0x398] sm:$0xff]  ;;  %v2643_v35 = vld [vmem:[%s3584_s27 + $0x390] sm:$0xff] }
 0x188   : > { %1862 = vst [vmem:[%s3709_s30 + $0xa0] sm:$0xff] %v1838_v40  ;;  %1861 = vst [vmem:[%s3709_s30 + $0x70] sm:$0xff] %v1837_v41  ;;  %2177 = vrot.lane.b32.xlu1 %v2758_v36, %s2930_s28  ;;  %2175 = vrot.lane.b32.xlu0 %v2757_v37, %s2930_s28 }
 0x189   : > { %v2798_v36 = vld [vmem:[%s3584_s27 + $0x868] sm:$0xff]  ;;  %v2797_v37 = vld [vmem:[%s3584_s27 + $0x860] sm:$0xff] }
 0x18a   : > { %v1774_v46 = vpop.permute.xlu1 %1773  ;;  %v1772_v47 = vpop.permute.xlu0 %1771 }
 0x18b   : > { %v1840_v48 = vsel %vm1446_vm0, %v2630_v42, %v1774_v46  ;;  %v1839_v49 = vsel %vm1446_vm0, %v2629_v43, %v1772_v47  ;;  %v2646_v42 = vld [vmem:[%s3584_s27 + $0x3a8] sm:$0xff]  ;;  %v2645_v43 = vld [vmem:[%s3584_s27 + $0x3a0] sm:$0xff] }
 0x18c   : > { %1864 = vst [vmem:[%s3709_s30 + $0x100] sm:$0xff] %v1840_v48  ;;  %1863 = vst [vmem:[%s3709_s30 + $0xd0] sm:$0xff] %v1839_v49  ;;  %2181 = vrot.lane.b32.xlu1 %v2760_v44, %s2930_s28  ;;  %2179 = vrot.lane.b32.xlu0 %v2759_v45, %s2930_s28 }
 0x18d   : > { %v2800_v44 = vld [vmem:[%s3584_s27 + $0x878] sm:$0xff]  ;;  %v2799_v45 = vld [vmem:[%s3584_s27 + $0x870] sm:$0xff] }
 0x18e   : > { %v1778_v54 = vpop.permute.xlu1 %1777  ;;  %v1776_v55 = vpop.permute.xlu0 %1775 }
 0x18f   : > { %v1842_v56 = vsel %vm1446_vm0, %v2632_v50, %v1778_v54  ;;  %v1841_v57 = vsel %vm1446_vm0, %v2631_v51, %v1776_v55  ;;  %v2648_v50 = vld [vmem:[%s3584_s27 + $0x3b8] sm:$0xff]  ;;  %v2647_v51 = vld [vmem:[%s3584_s27 + $0x3b0] sm:$0xff] }
 0x190   : > { %1866 = vst [vmem:[%s3709_s30 + $0x160] sm:$0xff] %v1842_v56  ;;  %1865 = vst [vmem:[%s3709_s30 + $0x130] sm:$0xff] %v1841_v57  ;;  %2185 = vrot.lane.b32.xlu1 %v2762_v52, %s2930_s28  ;;  %2183 = vrot.lane.b32.xlu0 %v2761_v53, %s2930_s28 }
 0x191   : > { %v2802_v52 = vld [vmem:[%s3584_s27 + $0x888] sm:$0xff]  ;;  %v2801_v53 = vld [vmem:[%s3584_s27 + $0x880] sm:$0xff] }
 0x192   : > { %v1782_v62 = vpop.permute.xlu1 %1781  ;;  %v1780_v63 = vpop.permute.xlu0 %1779 }
 0x193   : > { %v1844_v0 = vsel %vm1446_vm0, %v2634_v58, %v1782_v62  ;;  %v1843_v1 = vsel %vm1446_vm0, %v2633_v59, %v1780_v63  ;;  %v2674_v58 = vld [vmem:[%s3584_s27 + $0x488] sm:$0xff]  ;;  %v2673_v59 = vld [vmem:[%s3584_s27 + $0x480] sm:$0xff] }
 0x194   : > { %1868 = vst [vmem:[%s3709_s30 + $0x1c0] sm:$0xff] %v1844_v0  ;;  %1867 = vst [vmem:[%s3709_s30 + $0x190] sm:$0xff] %v1843_v1  ;;  %2189 = vrot.lane.b32.xlu1 %v2764_v60, %s2930_s28  ;;  %2187 = vrot.lane.b32.xlu0 %v2763_v61, %s2930_s28 }
 0x195   : > { %v2804_v60 = vld [vmem:[%s3584_s27 + $0x898] sm:$0xff]  ;;  %v2803_v61 = vld [vmem:[%s3584_s27 + $0x890] sm:$0xff] }
 0x196   : > { %v1786_v6 = vpop.permute.xlu1 %1785  ;;  %v1784_v7 = vpop.permute.xlu0 %1783 }
 0x197   : > { %v1846_v8 = vsel %vm1446_vm0, %v2636_v2, %v1786_v6  ;;  %v1845_v9 = vsel %vm1446_vm0, %v2635_v3, %v1784_v7  ;;  %v2676_v2 = vld [vmem:[%s3584_s27 + $0x498] sm:$0xff]  ;;  %v2675_v3 = vld [vmem:[%s3584_s27 + $0x490] sm:$0xff] }
 0x198   : > { %1870 = vst [vmem:[%s3709_s30 + $0x220] sm:$0xff] %v1846_v8  ;;  %1869 = vst [vmem:[%s3709_s30 + $0x1f0] sm:$0xff] %v1845_v9  ;;  %2193 = vrot.lane.b32.xlu1 %v2766_v4, %s2930_s28  ;;  %2191 = vrot.lane.b32.xlu0 %v2765_v5, %s2930_s28 }
 0x199   : > { %v2806_v4 = vld [vmem:[%s3584_s27 + $0x8a8] sm:$0xff]  ;;  %v2805_v5 = vld [vmem:[%s3584_s27 + $0x8a0] sm:$0xff] }
 0x19a   : > { %v1790_v14 = vpop.permute.xlu1 %1789  ;;  %v1788_v15 = vpop.permute.xlu0 %1787 }
 0x19b   : > { %v1848_v16 = vsel %vm1446_vm0, %v2638_v10, %v1790_v14  ;;  %v1847_v17 = vsel %vm1446_vm0, %v2637_v11, %v1788_v15  ;;  %v2678_v10 = vld [vmem:[%s3584_s27 + $0x4a8] sm:$0xff]  ;;  %v2677_v11 = vld [vmem:[%s3584_s27 + $0x4a0] sm:$0xff] }
 0x19c   : > { %1872 = vst [vmem:[%s3709_s30 + $0x280] sm:$0xff] %v1848_v16  ;;  %1871 = vst [vmem:[%s3709_s30 + $0x250] sm:$0xff] %v1847_v17  ;;  %2197 = vrot.lane.b32.xlu1 %v2768_v12, %s2930_s28  ;;  %2195 = vrot.lane.b32.xlu0 %v2767_v13, %s2930_s28 }
 0x19d   : > { %v2808_v12 = vld [vmem:[%s3584_s27 + $0x8b8] sm:$0xff]  ;;  %v2807_v13 = vld [vmem:[%s3584_s27 + $0x8b0] sm:$0xff] }
 0x19e   : > { %v1794_v22 = vpop.permute.xlu1 %1793  ;;  %v1792_v23 = vpop.permute.xlu0 %1791 }
 0x19f   : > { %v1850_v24 = vsel %vm1446_vm0, %v2640_v18, %v1794_v22  ;;  %v1849_v25 = vsel %vm1446_vm0, %v2639_v19, %v1792_v23  ;;  %v2680_v18 = vld [vmem:[%s3584_s27 + $0x4b8] sm:$0xff]  ;;  %v2679_v19 = vld [vmem:[%s3584_s27 + $0x4b0] sm:$0xff] }
 0x1a0   : > { %1874 = vst [vmem:[%s3709_s30 + $0x2e0] sm:$0xff] %v1850_v24  ;;  %1873 = vst [vmem:[%s3709_s30 + $0x2b0] sm:$0xff] %v1849_v25  ;;  %2347 = vrot.lane.b32.xlu1 %v2794_v20, %s2930_s28  ;;  %2345 = vrot.lane.b32.xlu0 %v2793_v21, %s2930_s28 }
 0x1a1   : > { %v2810_v20 = vld [vmem:[%s3584_s27 + $0x8c8] sm:$0xff]  ;;  %v2809_v21 = vld [vmem:[%s3584_s27 + $0x8c0] sm:$0xff] }
 0x1a2   : > { %v1798_v30 = vpop.permute.xlu1 %1797  ;;  %v1796_v31 = vpop.permute.xlu0 %1795 }
 0x1a3   : > { %v1852_v32 = vsel %vm1446_vm0, %v2642_v26, %v1798_v30  ;;  %v1851_v33 = vsel %vm1446_vm0, %v2641_v27, %v1796_v31  ;;  %v2682_v26 = vld [vmem:[%s3584_s27 + $0x4c8] sm:$0xff]  ;;  %v2681_v27 = vld [vmem:[%s3584_s27 + $0x4c0] sm:$0xff] }
 0x1a4   : > { %1876 = vst [vmem:[%s3709_s30 + $0x340] sm:$0xff] %v1852_v32  ;;  %1875 = vst [vmem:[%s3709_s30 + $0x310] sm:$0xff] %v1851_v33  ;;  %2351 = vrot.lane.b32.xlu1 %v2796_v28, %s2930_s28  ;;  %2349 = vrot.lane.b32.xlu0 %v2795_v29, %s2930_s28 }
 0x1a5   : > { %v2812_v28 = vld [vmem:[%s3584_s27 + $0x8d8] sm:$0xff]  ;;  %v2811_v29 = vld [vmem:[%s3584_s27 + $0x8d0] sm:$0xff] }
 0x1a6   : > { %v1802_v38 = vpop.permute.xlu1 %1801  ;;  %v1800_v39 = vpop.permute.xlu0 %1799 }
 0x1a7   : > { %v1854_v40 = vsel %vm1446_vm0, %v2644_v34, %v1802_v38  ;;  %v1853_v41 = vsel %vm1446_vm0, %v2643_v35, %v1800_v39  ;;  %v2684_v34 = vld [vmem:[%s3584_s27 + $0x4d8] sm:$0xff]  ;;  %v2683_v35 = vld [vmem:[%s3584_s27 + $0x4d0] sm:$0xff] }
 0x1a8   : > { %1878 = vst [vmem:[%s3709_s30 + $0x3a0] sm:$0xff] %v1854_v40  ;;  %1877 = vst [vmem:[%s3709_s30 + $0x370] sm:$0xff] %v1853_v41  ;;  %2355 = vrot.lane.b32.xlu1 %v2798_v36, %s2930_s28  ;;  %2353 = vrot.lane.b32.xlu0 %v2797_v37, %s2930_s28 }
 0x1a9   : > { %v2814_v36 = vld [vmem:[%s3584_s27 + $0x8e8] sm:$0xff]  ;;  %v2813_v37 = vld [vmem:[%s3584_s27 + $0x8e0] sm:$0xff] }
 0x1aa   : > { %v1806_v46 = vpop.permute.xlu1 %1805  ;;  %v1804_v47 = vpop.permute.xlu0 %1803 }
 0x1ab   : > { %v1856_v48 = vsel %vm1446_vm0, %v2646_v42, %v1806_v46  ;;  %v1855_v49 = vsel %vm1446_vm0, %v2645_v43, %v1804_v47  ;;  %v2686_v42 = vld [vmem:[%s3584_s27 + $0x4e8] sm:$0xff]  ;;  %v2685_v43 = vld [vmem:[%s3584_s27 + $0x4e0] sm:$0xff] }
 0x1ac   : > { %1880 = vst [vmem:[%s3709_s30 + $0x400] sm:$0xff] %v1856_v48  ;;  %1879 = vst [vmem:[%s3709_s30 + $0x3d0] sm:$0xff] %v1855_v49  ;;  %2359 = vrot.lane.b32.xlu1 %v2800_v44, %s2930_s28  ;;  %2357 = vrot.lane.b32.xlu0 %v2799_v45, %s2930_s28 }
 0x1ad   : > { %v2816_v44 = vld [vmem:[%s3584_s27 + $0x8f8] sm:$0xff]  ;;  %v2815_v45 = vld [vmem:[%s3584_s27 + $0x8f0] sm:$0xff] }
 0x1ae   : > { %v1810_v54 = vpop.permute.xlu1 %1809  ;;  %v1808_v55 = vpop.permute.xlu0 %1807 }
 0x1af   : > { %v1858_v56 = vsel %vm1446_vm0, %v2648_v50, %v1810_v54  ;;  %v1857_v57 = vsel %vm1446_vm0, %v2647_v51, %v1808_v55  ;;  %v2688_v50 = vld [vmem:[%s3584_s27 + $0x4f8] sm:$0xff]  ;;  %v2687_v51 = vld [vmem:[%s3584_s27 + $0x4f0] sm:$0xff] }
 0x1b0   : > { %1882 = vst [vmem:[%s3709_s30 + $0x460] sm:$0xff] %v1858_v56  ;;  %1881 = vst [vmem:[%s3709_s30 + $0x430] sm:$0xff] %v1857_v57  ;;  %2363 = vrot.lane.b32.xlu1 %v2802_v52, %s2930_s28  ;;  %2361 = vrot.lane.b32.xlu0 %v2801_v53, %s2930_s28 }
 0x1b1   : > { %v2690_v56 = vld [vmem:[%s3584_s27 + $0x508] sm:$0xff]  ;;  %v2689_v57 = vld [vmem:[%s3584_s27 + $0x500] sm:$0xff] }
 0x1b2   : > { %v1960_v62 = vpop.permute.xlu1 %1959  ;;  %v1958_v63 = vpop.permute.xlu0 %1957 }
 0x1b3   : > { %v2030_v0 = vsel %vm1446_vm0, %v2674_v58, %v1960_v62  ;;  %v2029_v1 = vsel %vm1446_vm0, %v2673_v59, %v1958_v63  ;;  %v2692_v62 = vld [vmem:[%s3584_s27 + $0x518] sm:$0xff]  ;;  %v2691_v63 = vld [vmem:[%s3584_s27 + $0x510] sm:$0xff] }
 0x1b4   : > { %2054 = vst [vmem:[%s3709_s30 + $0x48] sm:$0xff] %v2030_v0  ;;  %2053 = vst [vmem:[%s3709_s30 + $0x18] sm:$0xff] %v2029_v1  ;;  %2367 = vrot.lane.b32.xlu1 %v2804_v60, %s2930_s28  ;;  %2365 = vrot.lane.b32.xlu0 %v2803_v61, %s2930_s28 }
 0x1b6   : > { %v1964_v6 = vpop.permute.xlu1 %1963  ;;  %v1962_v7 = vpop.permute.xlu0 %1961 }
 0x1b7   : > { %v2032_v8 = vsel %vm1446_vm0, %v2676_v2, %v1964_v6  ;;  %v2031_v9 = vsel %vm1446_vm0, %v2675_v3, %v1962_v7 }
 0x1b8   : > { %2056 = vst [vmem:[%s3709_s30 + $0xa8] sm:$0xff] %v2032_v8  ;;  %2055 = vst [vmem:[%s3709_s30 + $0x78] sm:$0xff] %v2031_v9  ;;  %2371 = vrot.lane.b32.xlu1 %v2806_v4, %s2930_s28  ;;  %2369 = vrot.lane.b32.xlu0 %v2805_v5, %s2930_s28 }
 0x1b9   : > { %v2694_v4 = vld [vmem:[%s3584_s27 + $0x528] sm:$0xff]  ;;  %v2693_v5 = vld [vmem:[%s3584_s27 + $0x520] sm:$0xff] }
 0x1ba   : > { %v1968_v14 = vpop.permute.xlu1 %1967  ;;  %v1966_v15 = vpop.permute.xlu0 %1965 }
 0x1bb   : > { %v2034_v16 = vsel %vm1446_vm0, %v2678_v10, %v1968_v14  ;;  %v2033_v17 = vsel %vm1446_vm0, %v2677_v11, %v1966_v15  ;;  %v2696_v10 = vld [vmem:[%s3584_s27 + $0x538] sm:$0xff]  ;;  %v2695_v11 = vld [vmem:[%s3584_s27 + $0x530] sm:$0xff] }
 0x1bc   : > { %2058 = vst [vmem:[%s3709_s30 + $0x108] sm:$0xff] %v2034_v16  ;;  %2057 = vst [vmem:[%s3709_s30 + $0xd8] sm:$0xff] %v2033_v17  ;;  %2375 = vrot.lane.b32.xlu1 %v2808_v12, %s2930_s28  ;;  %2373 = vrot.lane.b32.xlu0 %v2807_v13, %s2930_s28 }
 0x1bd   : > { %v2722_v16 = vld [vmem:[%s3584_s27 + $0x608] sm:$0xff]  ;;  %v2721_v17 = vld [vmem:[%s3584_s27 + $0x600] sm:$0xff] }
 0x1be   : > { %v1972_v22 = vpop.permute.xlu1 %1971  ;;  %v1970_v23 = vpop.permute.xlu0 %1969 }
 0x1bf   : > { %v2036_v24 = vsel %vm1446_vm0, %v2680_v18, %v1972_v22  ;;  %v2035_v25 = vsel %vm1446_vm0, %v2679_v19, %v1970_v23  ;;  %v2724_v22 = vld [vmem:[%s3584_s27 + $0x618] sm:$0xff]  ;;  %v2723_v23 = vld [vmem:[%s3584_s27 + $0x610] sm:$0xff] }
 0x1c0   : > { %2060 = vst [vmem:[%s3709_s30 + $0x168] sm:$0xff] %v2036_v24  ;;  %2059 = vst [vmem:[%s3709_s30 + $0x138] sm:$0xff] %v2035_v25  ;;  %2379 = vrot.lane.b32.xlu1 %v2810_v20, %s2930_s28  ;;  %2377 = vrot.lane.b32.xlu0 %v2809_v21, %s2930_s28 }
 0x1c2   : > { %v1976_v30 = vpop.permute.xlu1 %1975  ;;  %v1974_v31 = vpop.permute.xlu0 %1973 }
 0x1c3   : > { %v2038_v32 = vsel %vm1446_vm0, %v2682_v26, %v1976_v30  ;;  %v2037_v33 = vsel %vm1446_vm0, %v2681_v27, %v1974_v31 }
 0x1c4   : > { %2062 = vst [vmem:[%s3709_s30 + $0x1c8] sm:$0xff] %v2038_v32  ;;  %2061 = vst [vmem:[%s3709_s30 + $0x198] sm:$0xff] %v2037_v33  ;;  %2383 = vrot.lane.b32.xlu1 %v2812_v28, %s2930_s28  ;;  %2381 = vrot.lane.b32.xlu0 %v2811_v29, %s2930_s28 }
 0x1c5   : > { %v2726_v28 = vld [vmem:[%s3584_s27 + $0x628] sm:$0xff]  ;;  %v2725_v29 = vld [vmem:[%s3584_s27 + $0x620] sm:$0xff] }
 0x1c6   : > { %v1980_v38 = vpop.permute.xlu1 %1979  ;;  %v1978_v39 = vpop.permute.xlu0 %1977 }
 0x1c7   : > { %v2040_v40 = vsel %vm1446_vm0, %v2684_v34, %v1980_v38  ;;  %v2039_v41 = vsel %vm1446_vm0, %v2683_v35, %v1978_v39  ;;  %v2728_v34 = vld [vmem:[%s3584_s27 + $0x638] sm:$0xff]  ;;  %v2727_v35 = vld [vmem:[%s3584_s27 + $0x630] sm:$0xff] }
 0x1c8   : > { %2064 = vst [vmem:[%s3709_s30 + $0x228] sm:$0xff] %v2040_v40  ;;  %2063 = vst [vmem:[%s3709_s30 + $0x1f8] sm:$0xff] %v2039_v41  ;;  %2387 = vrot.lane.b32.xlu1 %v2814_v36, %s2930_s28  ;;  %2385 = vrot.lane.b32.xlu0 %v2813_v37, %s2930_s28 }
 0x1c9   : > { %v2730_v40 = vld [vmem:[%s3584_s27 + $0x648] sm:$0xff]  ;;  %v2729_v41 = vld [vmem:[%s3584_s27 + $0x640] sm:$0xff] }
 0x1ca   : > { %v1984_v46 = vpop.permute.xlu1 %1983  ;;  %v1982_v47 = vpop.permute.xlu0 %1981 }
 0x1cb   : > { %v2042_v48 = vsel %vm1446_vm0, %v2686_v42, %v1984_v46  ;;  %v2041_v49 = vsel %vm1446_vm0, %v2685_v43, %v1982_v47  ;;  %v2732_v46 = vld [vmem:[%s3584_s27 + $0x658] sm:$0xff]  ;;  %v2731_v47 = vld [vmem:[%s3584_s27 + $0x650] sm:$0xff] }
 0x1cc   : > { %2066 = vst [vmem:[%s3709_s30 + $0x288] sm:$0xff] %v2042_v48  ;;  %2065 = vst [vmem:[%s3709_s30 + $0x258] sm:$0xff] %v2041_v49  ;;  %2391 = vrot.lane.b32.xlu1 %v2816_v44, %s2930_s28  ;;  %2389 = vrot.lane.b32.xlu0 %v2815_v45, %s2930_s28 }
 0x1ce   : > { %v1988_v52 = vpop.permute.xlu1 %1987  ;;  %v1986_v53 = vpop.permute.xlu0 %1985 }
 0x1cf   : > { %v2044_v54 = vsel %vm1446_vm0, %v2688_v50, %v1988_v52  ;;  %v2043_v55 = vsel %vm1446_vm0, %v2687_v51, %v1986_v53  ;;  %v2734_v52 = vld [vmem:[%s3584_s27 + $0x668] sm:$0xff]  ;;  %v2733_v53 = vld [vmem:[%s3584_s27 + $0x660] sm:$0xff] }
 0x1d0   : > { %2068 = vst [vmem:[%s3709_s30 + $0x2e8] sm:$0xff] %v2044_v54  ;;  %2067 = vst [vmem:[%s3709_s30 + $0x2b8] sm:$0xff] %v2043_v55 }
 0x1d2   : > { %v1992_v58 = vpop.permute.xlu1 %1991  ;;  %v1990_v59 = vpop.permute.xlu0 %1989 }
 0x1d3   : > { %v2046_v60 = vsel %vm1446_vm0, %v2690_v56, %v1992_v58  ;;  %v2045_v61 = vsel %vm1446_vm0, %v2689_v57, %v1990_v59  ;;  %v2736_v58 = vld [vmem:[%s3584_s27 + $0x678] sm:$0xff]  ;;  %v2735_v59 = vld [vmem:[%s3584_s27 + $0x670] sm:$0xff] }
 0x1d4   : > { %2070 = vst [vmem:[%s3709_s30 + $0x348] sm:$0xff] %v2046_v60  ;;  %2069 = vst [vmem:[%s3709_s30 + $0x318] sm:$0xff] %v2045_v61 }
 0x1d6   : > { %v1996_v0 = vpop.permute.xlu1 %1995  ;;  %v1994_v1 = vpop.permute.xlu0 %1993 }
 0x1d7   : > { %v2048_v2 = vsel %vm1446_vm0, %v2692_v62, %v1996_v0  ;;  %v2047_v3 = vsel %vm1446_vm0, %v2691_v63, %v1994_v1  ;;  %v2738_v0 = vld [vmem:[%s3584_s27 + $0x688] sm:$0xff]  ;;  %v2737_v1 = vld [vmem:[%s3584_s27 + $0x680] sm:$0xff] }
 0x1d8   : > { %2072 = vst [vmem:[%s3709_s30 + $0x3a8] sm:$0xff] %v2048_v2  ;;  %2071 = vst [vmem:[%s3709_s30 + $0x378] sm:$0xff] %v2047_v3 }
 0x1da   : > { %v2000_v6 = vpop.permute.xlu1 %1999  ;;  %v1998_v7 = vpop.permute.xlu0 %1997 }
 0x1db   : > { %v2050_v8 = vsel %vm1446_vm0, %v2694_v4, %v2000_v6  ;;  %v2049_v9 = vsel %vm1446_vm0, %v2693_v5, %v1998_v7  ;;  %v2740_v6 = vld [vmem:[%s3584_s27 + $0x698] sm:$0xff]  ;;  %v2739_v7 = vld [vmem:[%s3584_s27 + $0x690] sm:$0xff] }
 0x1dc   : > { %2074 = vst [vmem:[%s3709_s30 + $0x408] sm:$0xff] %v2050_v8  ;;  %2073 = vst [vmem:[%s3709_s30 + $0x3d8] sm:$0xff] %v2049_v9 }
 0x1de   : > { %v2004_v12 = vpop.permute.xlu1 %2003  ;;  %v2002_v13 = vpop.permute.xlu0 %2001 }
 0x1df   : > { %v2052_v14 = vsel %vm1446_vm0, %v2696_v10, %v2004_v12  ;;  %v2051_v15 = vsel %vm1446_vm0, %v2695_v11, %v2002_v13  ;;  %v2742_v12 = vld [vmem:[%s3584_s27 + $0x6a8] sm:$0xff]  ;;  %v2741_v13 = vld [vmem:[%s3584_s27 + $0x6a0] sm:$0xff] }
 0x1e0   : > { %2076 = vst [vmem:[%s3709_s30 + $0x468] sm:$0xff] %v2052_v14  ;;  %2075 = vst [vmem:[%s3709_s30 + $0x438] sm:$0xff] %v2051_v15 }
 0x1e2   : > { %v2154_v18 = vpop.permute.xlu1 %2153  ;;  %v2152_v19 = vpop.permute.xlu0 %2151 }
 0x1e3   : > { %v2224_v20 = vsel %vm1446_vm0, %v2722_v16, %v2154_v18  ;;  %v2223_v21 = vsel %vm1446_vm0, %v2721_v17, %v2152_v19  ;;  %v2744_v18 = vld [vmem:[%s3584_s27 + $0x6b8] sm:$0xff]  ;;  %v2743_v19 = vld [vmem:[%s3584_s27 + $0x6b0] sm:$0xff] }
 0x1e4   : > { %2248 = vst [vmem:[%s3709_s30 + $0x50] sm:$0xff] %v2224_v20  ;;  %2247 = vst [vmem:[%s3709_s30 + $0x20] sm:$0xff] %v2223_v21 }
 0x1e6   : > { %v2158_v24 = vpop.permute.xlu1 %2157  ;;  %v2156_v25 = vpop.permute.xlu0 %2155 }
 0x1e7   : > { %v2226_v26 = vsel %vm1446_vm0, %v2724_v22, %v2158_v24  ;;  %v2225_v27 = vsel %vm1446_vm0, %v2723_v23, %v2156_v25  ;;  %v2770_v24 = vld [vmem:[%s3584_s27 + $0x788] sm:$0xff]  ;;  %v2769_v25 = vld [vmem:[%s3584_s27 + $0x780] sm:$0xff] }
 0x1e8   : > { %2250 = vst [vmem:[%s3709_s30 + $0xb0] sm:$0xff] %v2226_v26  ;;  %2249 = vst [vmem:[%s3709_s30 + $0x80] sm:$0xff] %v2225_v27 }
 0x1ea   : > { %v2162_v30 = vpop.permute.xlu1 %2161  ;;  %v2160_v31 = vpop.permute.xlu0 %2159 }
 0x1eb   : > { %v2228_v32 = vsel %vm1446_vm0, %v2726_v28, %v2162_v30  ;;  %v2227_v33 = vsel %vm1446_vm0, %v2725_v29, %v2160_v31  ;;  %v2772_v30 = vld [vmem:[%s3584_s27 + $0x798] sm:$0xff]  ;;  %v2771_v31 = vld [vmem:[%s3584_s27 + $0x790] sm:$0xff] }
 0x1ec   : > { %2252 = vst [vmem:[%s3709_s30 + $0x110] sm:$0xff] %v2228_v32  ;;  %2251 = vst [vmem:[%s3709_s30 + $0xe0] sm:$0xff] %v2227_v33 }
 0x1ee   : > { %v2166_v36 = vpop.permute.xlu1 %2165  ;;  %v2164_v37 = vpop.permute.xlu0 %2163 }
 0x1ef   : > { %v2230_v38 = vsel %vm1446_vm0, %v2728_v34, %v2166_v36  ;;  %v2229_v39 = vsel %vm1446_vm0, %v2727_v35, %v2164_v37  ;;  %v2774_v36 = vld [vmem:[%s3584_s27 + $0x7a8] sm:$0xff]  ;;  %v2773_v37 = vld [vmem:[%s3584_s27 + $0x7a0] sm:$0xff] }
 0x1f0   : > { %2254 = vst [vmem:[%s3709_s30 + $0x170] sm:$0xff] %v2230_v38  ;;  %2253 = vst [vmem:[%s3709_s30 + $0x140] sm:$0xff] %v2229_v39 }
 0x1f2   : > { %v2170_v42 = vpop.permute.xlu1 %2169  ;;  %v2168_v43 = vpop.permute.xlu0 %2167 }
 0x1f3   : > { %v2232_v44 = vsel %vm1446_vm0, %v2730_v40, %v2170_v42  ;;  %v2231_v45 = vsel %vm1446_vm0, %v2729_v41, %v2168_v43  ;;  %v2776_v42 = vld [vmem:[%s3584_s27 + $0x7b8] sm:$0xff]  ;;  %v2775_v43 = vld [vmem:[%s3584_s27 + $0x7b0] sm:$0xff] }
 0x1f4   : > { %2256 = vst [vmem:[%s3709_s30 + $0x1d0] sm:$0xff] %v2232_v44  ;;  %2255 = vst [vmem:[%s3709_s30 + $0x1a0] sm:$0xff] %v2231_v45 }
 0x1f6   : > { %v2174_v48 = vpop.permute.xlu1 %2173  ;;  %v2172_v49 = vpop.permute.xlu0 %2171 }
 0x1f7   : > { %v2234_v50 = vsel %vm1446_vm0, %v2732_v46, %v2174_v48  ;;  %v2233_v51 = vsel %vm1446_vm0, %v2731_v47, %v2172_v49  ;;  %v2778_v48 = vld [vmem:[%s3584_s27 + $0x7c8] sm:$0xff]  ;;  %v2777_v49 = vld [vmem:[%s3584_s27 + $0x7c0] sm:$0xff] }
 0x1f8   : > { %2258 = vst [vmem:[%s3709_s30 + $0x230] sm:$0xff] %v2234_v50  ;;  %2257 = vst [vmem:[%s3709_s30 + $0x200] sm:$0xff] %v2233_v51 }
 0x1fa   : > { %v2178_v54 = vpop.permute.xlu1 %2177  ;;  %v2176_v55 = vpop.permute.xlu0 %2175 }
 0x1fb   : > { %v2236_v56 = vsel %vm1446_vm0, %v2734_v52, %v2178_v54  ;;  %v2235_v57 = vsel %vm1446_vm0, %v2733_v53, %v2176_v55  ;;  %v2780_v54 = vld [vmem:[%s3584_s27 + $0x7d8] sm:$0xff]  ;;  %v2779_v55 = vld [vmem:[%s3584_s27 + $0x7d0] sm:$0xff] }
 0x1fc   : > { %2260 = vst [vmem:[%s3709_s30 + $0x290] sm:$0xff] %v2236_v56  ;;  %2259 = vst [vmem:[%s3709_s30 + $0x260] sm:$0xff] %v2235_v57 }
 0x1fe   : > { %v2182_v60 = vpop.permute.xlu1 %2181  ;;  %v2180_v61 = vpop.permute.xlu0 %2179 }
 0x1ff   : > { %v2238_v62 = vsel %vm1446_vm0, %v2736_v58, %v2182_v60  ;;  %v2237_v63 = vsel %vm1446_vm0, %v2735_v59, %v2180_v61  ;;  %v2782_v60 = vld [vmem:[%s3584_s27 + $0x7e8] sm:$0xff]  ;;  %v2781_v61 = vld [vmem:[%s3584_s27 + $0x7e0] sm:$0xff] }
 0x200   : > { %2262 = vst [vmem:[%s3709_s30 + $0x2f0] sm:$0xff] %v2238_v62  ;;  %2261 = vst [vmem:[%s3709_s30 + $0x2c0] sm:$0xff] %v2237_v63 }
 0x202   : > { %v2186_v2 = vpop.permute.xlu1 %2185  ;;  %v2184_v3 = vpop.permute.xlu0 %2183 }
 0x203   : > { %v2240_v4 = vsel %vm1446_vm0, %v2738_v0, %v2186_v2  ;;  %v2239_v5 = vsel %vm1446_vm0, %v2737_v1, %v2184_v3  ;;  %v2784_v2 = vld [vmem:[%s3584_s27 + $0x7f8] sm:$0xff]  ;;  %v2783_v3 = vld [vmem:[%s3584_s27 + $0x7f0] sm:$0xff] }
 0x204   : > { %2264 = vst [vmem:[%s3709_s30 + $0x350] sm:$0xff] %v2240_v4  ;;  %2263 = vst [vmem:[%s3709_s30 + $0x320] sm:$0xff] %v2239_v5 }
 0x206   : > { %v2190_v8 = vpop.permute.xlu1 %2189  ;;  %v2188_v9 = vpop.permute.xlu0 %2187 }
 0x207   : > { %v2242_v10 = vsel %vm1446_vm0, %v2740_v6, %v2190_v8  ;;  %v2241_v11 = vsel %vm1446_vm0, %v2739_v7, %v2188_v9  ;;  %v2786_v8 = vld [vmem:[%s3584_s27 + $0x808] sm:$0xff]  ;;  %v2785_v9 = vld [vmem:[%s3584_s27 + $0x800] sm:$0xff] }
 0x208   : > { %2266 = vst [vmem:[%s3709_s30 + $0x3b0] sm:$0xff] %v2242_v10  ;;  %2265 = vst [vmem:[%s3709_s30 + $0x380] sm:$0xff] %v2241_v11 }
 0x20a   : > { %v2194_v14 = vpop.permute.xlu1 %2193  ;;  %v2192_v15 = vpop.permute.xlu0 %2191 }
 0x20b   : > { %v2244_v16 = vsel %vm1446_vm0, %v2742_v12, %v2194_v14  ;;  %v2243_v17 = vsel %vm1446_vm0, %v2741_v13, %v2192_v15  ;;  %v2788_v14 = vld [vmem:[%s3584_s27 + $0x818] sm:$0xff]  ;;  %v2787_v15 = vld [vmem:[%s3584_s27 + $0x810] sm:$0xff] }
 0x20c   : > { %2268 = vst [vmem:[%s3709_s30 + $0x410] sm:$0xff] %v2244_v16  ;;  %2267 = vst [vmem:[%s3709_s30 + $0x3e0] sm:$0xff] %v2243_v17 }
 0x20e   : > { %v2198_v20 = vpop.permute.xlu1 %2197  ;;  %v2196_v21 = vpop.permute.xlu0 %2195 }
 0x20f   : > { %v2246_v22 = vsel %vm1446_vm0, %v2744_v18, %v2198_v20  ;;  %v2245_v23 = vsel %vm1446_vm0, %v2743_v19, %v2196_v21  ;;  %v2790_v20 = vld [vmem:[%s3584_s27 + $0x828] sm:$0xff]  ;;  %v2789_v21 = vld [vmem:[%s3584_s27 + $0x820] sm:$0xff] }
 0x210   : > { %2270 = vst [vmem:[%s3709_s30 + $0x470] sm:$0xff] %v2246_v22  ;;  %2269 = vst [vmem:[%s3709_s30 + $0x440] sm:$0xff] %v2245_v23 }
 0x212   : > { %v2348_v26 = vpop.permute.xlu1 %2347  ;;  %v2346_v27 = vpop.permute.xlu0 %2345 }
 0x213   : > { %v2418_v28 = vsel %vm1446_vm0, %v2770_v24, %v2348_v26  ;;  %v2417_v29 = vsel %vm1446_vm0, %v2769_v25, %v2346_v27  ;;  %v2792_v26 = vld [vmem:[%s3584_s27 + $0x838] sm:$0xff]  ;;  %v2791_v27 = vld [vmem:[%s3584_s27 + $0x830] sm:$0xff] }
 0x214   : > { %2442 = vst [vmem:[%s3709_s30 + $0x58] sm:$0xff] %v2418_v28  ;;  %2441 = vst [vmem:[%s3709_s30 + $0x28] sm:$0xff] %v2417_v29 }
 0x216   : > { %v2352_v32 = vpop.permute.xlu1 %2351  ;;  %v2350_v33 = vpop.permute.xlu0 %2349 }
 0x217   : > { %v2420_v34 = vsel %vm1446_vm0, %v2772_v30, %v2352_v32  ;;  %v2419_v35 = vsel %vm1446_vm0, %v2771_v31, %v2350_v33 }
 0x218   : > { %2444 = vst [vmem:[%s3709_s30 + $0xb8] sm:$0xff] %v2420_v34  ;;  %2443 = vst [vmem:[%s3709_s30 + $0x88] sm:$0xff] %v2419_v35 }
 0x21a   : > { %v2356_v38 = vpop.permute.xlu1 %2355  ;;  %v2354_v39 = vpop.permute.xlu0 %2353 }
 0x21b   : > { %v2422_v40 = vsel %vm1446_vm0, %v2774_v36, %v2356_v38  ;;  %v2421_v41 = vsel %vm1446_vm0, %v2773_v37, %v2354_v39 }
 0x21c   : > { %2446 = vst [vmem:[%s3709_s30 + $0x118] sm:$0xff] %v2422_v40  ;;  %2445 = vst [vmem:[%s3709_s30 + $0xe8] sm:$0xff] %v2421_v41 }
 0x21e   : > { %v2360_v44 = vpop.permute.xlu1 %2359  ;;  %v2358_v45 = vpop.permute.xlu0 %2357 }
 0x21f   : > { %v2424_v46 = vsel %vm1446_vm0, %v2776_v42, %v2360_v44  ;;  %v2423_v47 = vsel %vm1446_vm0, %v2775_v43, %v2358_v45 }
 0x220   : > { %2448 = vst [vmem:[%s3709_s30 + $0x178] sm:$0xff] %v2424_v46  ;;  %2447 = vst [vmem:[%s3709_s30 + $0x148] sm:$0xff] %v2423_v47 }
 0x222   : > { %v2364_v50 = vpop.permute.xlu1 %2363  ;;  %v2362_v51 = vpop.permute.xlu0 %2361 }
 0x223   : > { %v2426_v52 = vsel %vm1446_vm0, %v2778_v48, %v2364_v50  ;;  %v2425_v53 = vsel %vm1446_vm0, %v2777_v49, %v2362_v51 }
 0x224   : > { %2450 = vst [vmem:[%s3709_s30 + $0x1d8] sm:$0xff] %v2426_v52  ;;  %2449 = vst [vmem:[%s3709_s30 + $0x1a8] sm:$0xff] %v2425_v53 }
 0x226   : > { %v2368_v56 = vpop.permute.xlu1 %2367  ;;  %v2366_v57 = vpop.permute.xlu0 %2365 }
 0x227   : > { %v2428_v58 = vsel %vm1446_vm0, %v2780_v54, %v2368_v56  ;;  %v2427_v59 = vsel %vm1446_vm0, %v2779_v55, %v2366_v57 }
 0x228   : > { %2452 = vst [vmem:[%s3709_s30 + $0x238] sm:$0xff] %v2428_v58  ;;  %2451 = vst [vmem:[%s3709_s30 + $0x208] sm:$0xff] %v2427_v59 }
 0x22a   : > { %v2372_v62 = vpop.permute.xlu1 %2371  ;;  %v2370_v63 = vpop.permute.xlu0 %2369 }
 0x22b   : > { %v2430_v0 = vsel %vm1446_vm0, %v2782_v60, %v2372_v62  ;;  %v2429_v1 = vsel %vm1446_vm0, %v2781_v61, %v2370_v63 }
 0x22c   : > { %2454 = vst [vmem:[%s3709_s30 + $0x298] sm:$0xff] %v2430_v0  ;;  %2453 = vst [vmem:[%s3709_s30 + $0x268] sm:$0xff] %v2429_v1 }
 0x22e   : > { %v2376_v4 = vpop.permute.xlu1 %2375  ;;  %v2374_v5 = vpop.permute.xlu0 %2373 }
 0x22f   : > { %v2432_v6 = vsel %vm1446_vm0, %v2784_v2, %v2376_v4  ;;  %v2431_v7 = vsel %vm1446_vm0, %v2783_v3, %v2374_v5 }
 0x230   : > { %2456 = vst [vmem:[%s3709_s30 + $0x2f8] sm:$0xff] %v2432_v6  ;;  %2455 = vst [vmem:[%s3709_s30 + $0x2c8] sm:$0xff] %v2431_v7 }
 0x232   : > { %v2380_v10 = vpop.permute.xlu1 %2379  ;;  %v2378_v11 = vpop.permute.xlu0 %2377 }
 0x233   : > { %v2434_v12 = vsel %vm1446_vm0, %v2786_v8, %v2380_v10  ;;  %v2433_v13 = vsel %vm1446_vm0, %v2785_v9, %v2378_v11 }
 0x234   : > { %2458 = vst [vmem:[%s3709_s30 + $0x358] sm:$0xff] %v2434_v12  ;;  %2457 = vst [vmem:[%s3709_s30 + $0x328] sm:$0xff] %v2433_v13 }
 0x236   : > { %v2384_v16 = vpop.permute.xlu1 %2383  ;;  %v2382_v17 = vpop.permute.xlu0 %2381 }
 0x237   : > { %v2436_v18 = vsel %vm1446_vm0, %v2788_v14, %v2384_v16  ;;  %v2435_v19 = vsel %vm1446_vm0, %v2787_v15, %v2382_v17 }
 0x238   : > { %2460 = vst [vmem:[%s3709_s30 + $0x3b8] sm:$0xff] %v2436_v18  ;;  %2459 = vst [vmem:[%s3709_s30 + $0x388] sm:$0xff] %v2435_v19 }
 0x23a   : > { %v2388_v22 = vpop.permute.xlu1 %2387  ;;  %v2386_v23 = vpop.permute.xlu0 %2385 }
 0x23b   : > { %v2438_v24 = vsel %vm1446_vm0, %v2790_v20, %v2388_v22  ;;  %v2437_v25 = vsel %vm1446_vm0, %v2789_v21, %v2386_v23 }
 0x23c   : > { %2462 = vst [vmem:[%s3709_s30 + $0x418] sm:$0xff] %v2438_v24  ;;  %2461 = vst [vmem:[%s3709_s30 + $0x3e8] sm:$0xff] %v2437_v25 }
 0x23e   : > { %v2392_v28 = vpop.permute.xlu1 %2391  ;;  %v2390_v29 = vpop.permute.xlu0 %2389 }
 0x23f   : > { %v2440_v30 = vsel %vm1446_vm0, %v2792_v26, %v2392_v28  ;;  %v2439_v31 = vsel %vm1446_vm0, %v2791_v27, %v2390_v29 }
 0x240   : > { %2464 = vst [vmem:[%s3709_s30 + $0x478] sm:$0xff] %v2440_v30  ;;  %2463 = vst [vmem:[%s3709_s30 + $0x448] sm:$0xff] %v2439_v31 }
 0x241   : > { %2881 = shalt.err (!%p2878_p5)
}
 0x242   : > { %s2882_s20 = scalar_lea.hbm %s4311_s11, 18432  ;;  %s2886_s23 = scalar_lea.hbm %s4361_s1, 36864 }
 0x243   : > { %p2883_p7 = scmp.ne.s32.totalorder %s4311_s11, %s2882_s20  ;;  %p2887_p12 = scmp.lt.s32.totalorder %s4311_s11, %s4361_s1 }
 0x244   : > { %p2888_p13 = scmp.lt.s32.totalorder %s2886_s23, %s2882_s20 }
 0x245   : > { %p2884_p10 = pnand %p2883_p7, %p2982_p6 }
 0x246   : > { %p2889_p0 = por %p2888_p13, %p2887_p12 }
 0x247   : > { %p2885_p11 = pneg %p2884_p10 }
 0x249   : > { %p2890_p1 = pnand %p2889_p0, %p2885_p11 }
 0x24b   : > { %2893 = shalt.err (!%p2890_p1)
}
 0x24c   : > { %s2932_s27 = smov 768   ;;  %s2933_s28 = smov 48  }
 0x24d   : > { %2825 = dma.vmem_to_hbm [thread:$0]  (%p2982_p6), %s4313_s3, 18432, %s4311_s11, %s2466_s10, %s2932_s27, %s2932_s27, %s2933_s28  }
 0x24e PF: > { %s2495_s29 = sand.u32 1, %s2916_s6   ;;  %p2828_p2 = pnand %p2550_p9, %p2986_p8 }
 0x24f   : > { %s2496_s30 = scalar_lea.sflag [#allocation4], %s2495_s29 }
 0x250   : > { %p2829_p3 = pneg %p2828_p2 }
 0x252   : > { %2911 = dma.done.wait (%p2829_p3), %s2496_s30, 18432  }
 0x253   : > { %2913 = vsyncadd (%p2829_p3), %s2496_s30, 4294948864  ;;  %p11_p4 = scmp.ge.s32.totalorder %s2967_s12, 4   ;;  %s4364_s6 = smov %s2920_s7 }
 0x254   : > { %s4365_s7 = smov %s2924_s8  ;;  %s4366_s8 = smov %s2980_s15 }
 0x255   : > { %s4367_s9 = smov %s2967_s12  ;;  %13 = sbr.rel (!%p11_p4) target bundleno = 3 (0x3), region = 113 }
 0x25a   :  { %2501 = vsyncpa [#allocation4], 1 }
 0x25b   :  { %2503 = vsyncpa [#allocation4 + $0x1], 1 }

</bundles_post_ra>
